<compile_context>
chip_gen: v7x
topology: tpu7x:2x2x1
jax: 0.10.0
libtpu: 0.0.40
codegen_flags: <defaults>
</compile_context>

<pallas_src>
import functools

import jax
import jax.numpy as jnp
from jax.experimental import pallas as pl
from jax.experimental.pallas import tpu as pltpu

_LANE = 128


def _round_up(n, m):
    return ((n + m - 1) // m) * m


def _pad2(a, rows, cols):
    out = jnp.zeros((rows, cols), a.dtype)
    return out.at[: a.shape[0], : a.shape[1]].set(a)


# ---------------------------------------------------------------------------
# Kernel
# ---------------------------------------------------------------------------
def vae_kernel(xin_ref, w1_ref, b1_ref, wml_ref, bml_ref, w3_ref, b3_ref,
               w4_ref, b4_ref, out_ref, *, input_dim, z_dim, z_pad):
    cdt = xin_ref.dtype            # MXU compute dtype (bf16)
    f32 = jnp.float32

    xin = xin_ref[...]             # (T, S) packed slab: [eps | x | 0...]

    # ---- encode: h1 = relu([eps|x|0] @ w1_embedded + b1)
    # (w1 rows live at [z_dim, z_dim+input_dim); the eps columns hit zero rows)
    h1 = jnp.dot(xin, w1_ref[...], preferred_element_type=f32) + b1_ref[...]
    h1 = jnp.maximum(h1, 0.0).astype(cdt)

    # ---- fused mu/logvar head: one (hid_pad, 2*z_pad) matmul, 128-aligned split after
    ml = jnp.dot(h1, wml_ref[...], preferred_element_type=f32) + bml_ref[...]
    mu = ml[:, :z_pad]
    logvar = ml[:, z_pad:]

    # ---- reparameterize: z = mu + eps * exp(0.5*logvar)   (f32 on VPU/EUP)
    eps = xin[:, :z_pad].astype(f32)          # lanes [0, z_dim) hold eps (128-aligned slice)
    z = mu + eps * jnp.exp(0.5 * logvar)      # padded logvar lanes are exactly 0 -> std = 1
    lane = jax.lax.broadcasted_iota(jnp.int32, z.shape, 1)
    z = jnp.where(lane < z_dim, z, 0.0)       # keep padded z lanes exactly zero for the MXU

    # ---- decode
    h3 = jnp.dot(z.astype(cdt), w3_ref[...], preferred_element_type=f32) + b3_ref[...]
    h3 = jnp.maximum(h3, 0.0).astype(cdt)
    logits = jnp.dot(h3, w4_ref[...], preferred_element_type=f32) + b4_ref[...]
    recon = jax.nn.sigmoid(logits)

    # ---- pack [recon | mu | logvar | 0] into the single lane-dense output slab
    out_ref[...] = jnp.zeros_like(out_ref)
    out_ref[:, :input_dim] = recon[:, :input_dim]
    out_ref[:, input_dim:input_dim + z_dim] = mu[:, :z_dim]
    out_ref[:, input_dim + z_dim:input_dim + 2 * z_dim] = logvar[:, :z_dim]


# ---------------------------------------------------------------------------
# One-time weight packing (hoisted out of the per-call path)
# ---------------------------------------------------------------------------
def pack_params(params, *, compute_dtype=jnp.bfloat16):
    f32 = jnp.float32
    input_dim, hidden_dim = params["w1"].shape
    z_dim = params["w21"].shape[1]

    S = _round_up(z_dim + input_dim, _LANE)        # input slab width: [eps | x | 0]
    in_pad = _round_up(input_dim, _LANE)           # decoder logits width
    hid_pad = _round_up(hidden_dim, _LANE)
    z_pad = _round_up(z_dim, _LANE)
    P = _round_up(input_dim + 2 * z_dim, _LANE)    # packed output width

    # w1 embedded at row offset z_dim so the packed [eps|x] slab feeds it directly.
    w1 = jnp.zeros((S, hid_pad), compute_dtype)
    w1 = w1.at[z_dim:z_dim + input_dim, :hidden_dim].set(params["w1"].astype(compute_dtype))
    b1 = _pad2(params["b1"].astype(f32), 1, hid_pad)

    # Fused mu/logvar head: [w21 | w22] in one lane-dense matrix (128-aligned blocks).
    wml = jnp.zeros((hid_pad, 2 * z_pad), compute_dtype)
    wml = wml.at[:hidden_dim, :z_dim].set(params["w21"].astype(compute_dtype))
    wml = wml.at[:hidden_dim, z_pad:z_pad + z_dim].set(params["w22"].astype(compute_dtype))
    bml = jnp.zeros((1, 2 * z_pad), f32)
    bml = bml.at[:, :z_dim].set(params["b21"].astype(f32))
    bml = bml.at[:, z_pad:z_pad + z_dim].set(params["b22"].astype(f32))

    w3 = _pad2(params["w3"].astype(compute_dtype), z_pad, hid_pad)
    b3 = _pad2(params["b3"].astype(f32), 1, hid_pad)
    w4 = _pad2(params["w4"].astype(compute_dtype), hid_pad, in_pad)
    b4 = _pad2(params["b4"].astype(f32), 1, in_pad)

    dims = dict(input_dim=input_dim, hidden_dim=hidden_dim, z_dim=z_dim,
                S=S, in_pad=in_pad, hid_pad=hid_pad, z_pad=z_pad, P=P)
    return dict(w1=w1, b1=b1, wml=wml, bml=bml, w3=w3, b3=b3, w4=w4, b4=b4,
                compute_dtype=compute_dtype, dims=dims)


# ---------------------------------------------------------------------------
# Forward wrapper
# ---------------------------------------------------------------------------
def vae_forward(x, eps, packed, *, batch_tile=None, grid_steps=2):
    """VAE forward. x:(B,input_dim), eps:(B,z_dim). Returns (recon, mu, logvar) in f32.

    grid_steps=2 (default) gives two balanced "parallel" steps for dual-TC v7x;
    pass grid_steps=1 on single-TC v5e/v6e to run one big tile.
    """
    d = packed["dims"]
    cdt = packed["compute_dtype"]
    f32 = jnp.float32
    B = x.shape[0]
    input_dim, z_dim = d["input_dim"], d["z_dim"]
    S, in_pad, hid_pad, z_pad, P = d["S"], d["in_pad"], d["hid_pad"], d["z_pad"], d["P"]
    cb = jnp.dtype(cdt).itemsize

    # --- VMEM budget: double-buffered I/O tiles + resident (double-buffered) weights ---
    row_bytes = 2 * (S * cb + P * 4)
    w_bytes = 2 * ((S * hid_pad + hid_pad * 2 * z_pad + z_pad * hid_pad + hid_pad * in_pad) * cb
                   + (2 * hid_pad + 2 * z_pad + in_pad) * 4)
    budget = 40 * 1024 * 1024                      # headroom against v7x's 64 MiB / TC
    max_tile = max(16, ((budget - w_bytes) // max(row_bytes, 1)) // 16 * 16)

    rows = _round_up(B, 16)                        # bf16 packs 16 rows per sublane group
    if batch_tile is None:
        batch_tile = pl.cdiv(rows, max(1, int(grid_steps)))
    batch_tile = int(min(_round_up(max(int(batch_tile), 16), 16), rows, max_tile))
    B_pad = _round_up(B, batch_tile)
    grid = (B_pad // batch_tile,)

    # --- single packed bf16 input slab: [eps | x | 0] (one input stream) ---
    slab = jnp.zeros((B_pad, S), cdt)
    slab = slab.at[:B, :z_dim].set(eps.astype(cdt))
    slab = slab.at[:B, z_dim:z_dim + input_dim].set(x.astype(cdt))

    x_map = lambda i: (i, 0)
    w_map = lambda i: (0, 0)          # constant block index -> DMA'd once, VMEM-resident
    in_specs = [
        pl.BlockSpec((batch_tile, S), x_map),            # packed [eps | x] slab
        pl.BlockSpec((S, hid_pad), w_map),               # w1 (embedded at row offset z_dim)
        pl.BlockSpec((1, hid_pad), w_map),               # b1
        pl.BlockSpec((hid_pad, 2 * z_pad), w_map),       # [w21 | w22] fused head
        pl.BlockSpec((1, 2 * z_pad), w_map),             # [b21 | b22]
        pl.BlockSpec((z_pad, hid_pad), w_map),           # w3
        pl.BlockSpec((1, hid_pad), w_map),               # b3
        pl.BlockSpec((hid_pad, in_pad), w_map),          # w4
        pl.BlockSpec((1, in_pad), w_map),                # b4
    ]
    out_specs = pl.BlockSpec((batch_tile, P), x_map)     # packed [recon | mu | logvar]
    out_shape = jax.ShapeDtypeStruct((B_pad, P), f32)

    interm = batch_tile * (hid_pad + 4 * z_pad + in_pad) * 4      # rough live f32 temps
    vmem_limit = int(min(64 * 1024 * 1024,
                         max(16 * 1024 * 1024,
                             batch_tile * row_bytes + w_bytes + interm + (2 << 20))))

    out = pl.pallas_call(
        functools.partial(vae_kernel, input_dim=input_dim, z_dim=z_dim, z_pad=z_pad),
        grid_spec=pltpu.PrefetchScalarGridSpec(
            num_scalar_prefetch=0,
            grid=grid,
            in_specs=in_specs,
            out_specs=out_specs,
        ),
        out_shape=out_shape,
        compiler_params=pltpu.CompilerParams(
            dimension_semantics=("parallel",),
            vmem_limit_bytes=vmem_limit,
        ),
    )(slab, packed["w1"], packed["b1"], packed["wml"], packed["bml"],
      packed["w3"], packed["b3"], packed["w4"], packed["b4"])

    recon = out[:B, :input_dim]
    mu = out[:B, input_dim:input_dim + z_dim]
    logvar = out[:B, input_dim + z_dim:input_dim + 2 * z_dim]
    return recon, mu, logvar


# ---------------------------------------------------------------------------
# Params / reference
# ---------------------------------------------------------------------------
def init_params(key, input_dim, hidden_dim, z_dim):
    """Deterministic xavier-uniform-like init; weights stored as (in, out)."""
    def linear(k, fan_in, fan_out):
        kw, kb = jax.random.split(k)
        limit = (6.0 / (fan_in + fan_out)) ** 0.5
        w = jax.random.uniform(kw, (fan_in, fan_out), jnp.float32, -limit, limit)
        b = jax.random.uniform(kb, (1, fan_out), jnp.float32, -0.05, 0.05)
        return w, b

    ks = jax.random.split(key, 5)
    w1, b1 = linear(ks[0], input_dim, hidden_dim)
    w21, b21 = linear(ks[1], hidden_dim, z_dim)
    w22, b22 = linear(ks[2], hidden_dim, z_dim)
    w3, b3 = linear(ks[3], z_dim, hidden_dim)
    w4, b4 = linear(ks[4], hidden_dim, input_dim)
    return dict(w1=w1, b1=b1, w21=w21, b21=b21, w22=w22, b22=b22,
                w3=w3, b3=b3, w4=w4, b4=b4)


def vae_forward_ref(x, eps, p, *, compute_dtype=jnp.float32):
    """Pure-JAX reference mirroring the PyTorch VarGMM forward (optionally bf16 inputs)."""
    cdt = compute_dtype
    f32 = jnp.float32
    eps_q = eps.astype(cdt).astype(f32)   # mirror the kernel's bf16 input-slab quantization

    def dot(a, w):
        return jnp.dot(a.astype(cdt), w.astype(cdt), preferred_element_type=f32)

    h1 = jnp.maximum(dot(x, p["w1"]) + p["b1"], 0.0)
    mu = dot(h1, p["w21"]) + p["b21"]
    logvar = dot(h1, p["w22"]) + p["b22"]
    z = mu + eps_q * jnp.exp(0.5 * logvar)
    h3 = jnp.maximum(dot(z, p["w3"]) + p["b3"], 0.0)
    recon = jax.nn.sigmoid(dot(h3, p["w4"]) + p["b4"])
    return recon, mu, logvar


# TODO(synk): the rest of ExtSummarizer (pretrained BertModel encoder, ExtTransformerEncoder /
# Classifier / CRFLayer heads, sklearn GaussianMixture clustering, centrality scoring and the
# Adam training loop in train_varGMM) involves pretrained weights, host-side training and
# data-dependent Python control flow with no clean single-kernel Pallas equivalent; only the
# VarGMM VAE forward is implemented here.


if __name__ == "__main__":
    # Shapes implied by the module: VarGMM(input_dim, hidden_dim, z_dim=20).
    input_dim, hidden_dim, z_dim = 32, 64, 20
    batch = 256   # default grid_steps=2 -> two balanced 128-row tiles (both v7x TCs busy)

    key = jax.random.PRNGKey(0)
    k_x, k_eps, k_p = jax.random.split(key, 3)

    x = jax.random.normal(k_x, (batch, input_dim), jnp.float32)
    eps = jax.random.normal(k_eps, (batch, z_dim), jnp.float32)

    params = init_params(k_p, input_dim, hidden_dim, z_dim)
    packed = pack_params(params)          # one-time weight pad/cast, reused across calls

    recon, mu, logvar = vae_forward(x, eps, packed)
    jax.block_until_ready((recon, mu, logvar))

    assert recon.shape == (batch, input_dim)
    assert mu.shape == (batch, z_dim) and logvar.shape == (batch, z_dim)

    # Tight check against a reference that mirrors the kernel's bf16-input / f32-accum numerics.
    recon_m, mu_m, logvar_m = vae_forward_ref(x, eps, params, compute_dtype=jnp.bfloat16)
    assert jnp.allclose(recon, recon_m, atol=5e-3, rtol=1e-2), "recon mismatch (bf16 ref)"
    assert jnp.allclose(mu, mu_m, atol=5e-3, rtol=1e-2), "mu mismatch (bf16 ref)"
    assert jnp.allclose(logvar, logvar_m, atol=5e-3, rtol=1e-2), "logvar mismatch (bf16 ref)"

    # Loose sanity check against the pure-f32 reference (difference = bf16 MXU rounding).
    recon_f, mu_f, logvar_f = vae_forward_ref(x, eps, params, compute_dtype=jnp.float32)
    assert jnp.allclose(recon, recon_f, atol=1e-1, rtol=1e-1), "recon mismatch (f32 ref)"
    assert jnp.allclose(mu, mu_f, atol=1e-1, rtol=1e-1), "mu mismatch (f32 ref)"
    assert jnp.allclose(logvar, logvar_f, atol=1e-1, rtol=1e-1), "logvar mismatch (f32 ref)"

    print("KERNEL_OK")
</pallas_src>

<mosaic_0001>
module attributes {stable_mosaic.version = 11 : i64} {
  func.func @vae_kernel(%arg0: i32, %arg1: memref<128x128xbf16, #tpu.memory_space<vmem>>, %arg2: memref<128x128xbf16, #tpu.memory_space<vmem>>, %arg3: memref<1x128xf32, #tpu.memory_space<vmem>>, %arg4: memref<128x256xbf16, #tpu.memory_space<vmem>>, %arg5: memref<1x256xf32, #tpu.memory_space<vmem>>, %arg6: memref<128x128xbf16, #tpu.memory_space<vmem>>, %arg7: memref<1x128xf32, #tpu.memory_space<vmem>>, %arg8: memref<128x128xbf16, #tpu.memory_space<vmem>>, %arg9: memref<1x128xf32, #tpu.memory_space<vmem>>, %arg10: memref<128x128xf32, #tpu.memory_space<vmem>>) attributes {dimension_semantics = [#tpu.dimension_semantics<parallel>], iteration_bounds = array<i64: 2>, scalar_prefetch = 0 : i64, scratch_operands = 0 : i64, tpu.core_type = #tpu.core_type<tc>, window_params = [{transform_indices = @transform_0, window_bounds = array<i64: 128, 128>}, {pipeline_mode = #tpu.pipeline_mode<synchronous>, transform_indices = @transform_1, window_bounds = array<i64: 128, 128>}, {pipeline_mode = #tpu.pipeline_mode<synchronous>, transform_indices = @transform_2, window_bounds = array<i64: 1, 128>}, {pipeline_mode = #tpu.pipeline_mode<synchronous>, transform_indices = @transform_3, window_bounds = array<i64: 128, 256>}, {pipeline_mode = #tpu.pipeline_mode<synchronous>, transform_indices = @transform_4, window_bounds = array<i64: 1, 256>}, {pipeline_mode = #tpu.pipeline_mode<synchronous>, transform_indices = @transform_5, window_bounds = array<i64: 128, 128>}, {pipeline_mode = #tpu.pipeline_mode<synchronous>, transform_indices = @transform_6, window_bounds = array<i64: 1, 128>}, {pipeline_mode = #tpu.pipeline_mode<synchronous>, transform_indices = @transform_7, window_bounds = array<i64: 128, 128>}, {pipeline_mode = #tpu.pipeline_mode<synchronous>, transform_indices = @transform_8, window_bounds = array<i64: 1, 128>}, {transform_indices = @transform_9, window_bounds = array<i64: 128, 128>}]} {
    %c0 = arith.constant 0 : index
    %c0_0 = arith.constant 0 : index
    %0 = vector.load %arg1[%c0, %c0_0] : memref<128x128xbf16, #tpu.memory_space<vmem>>, vector<128x128xbf16>
    %c0_1 = arith.constant 0 : index
    %c0_2 = arith.constant 0 : index
    %1 = vector.load %arg2[%c0_1, %c0_2] : memref<128x128xbf16, #tpu.memory_space<vmem>>, vector<128x128xbf16>
    %cst = arith.constant dense<0.000000e+00> : vector<128x128xf32>
    %2 = tpu.matmul %0, %1, %cst {dimension_numbers = #tpu.dot_dimension_numbers<[1], [0], [0], [1], [0, 0, 1, 1], [], []>} : vector<128x128xbf16>, vector<128x128xbf16>, vector<128x128xf32> -> vector<128x128xf32>
    %c0_3 = arith.constant 0 : index
    %c0_4 = arith.constant 0 : index
    %3 = vector.load %arg3[%c0_3, %c0_4] : memref<1x128xf32, #tpu.memory_space<vmem>>, vector<1x128xf32>
    %4 = vector.broadcast %3 : vector<1x128xf32> to vector<128x128xf32>
    %5 = arith.addf %2, %4 : vector<128x128xf32>
    %cst_5 = arith.constant 0.000000e+00 : f32
    %6 = vector.broadcast %cst_5 : f32 to vector<128x128xf32>
    %7 = arith.maximumf %5, %6 : vector<128x128xf32>
    %8 = arith.truncf %7 : vector<128x128xf32> to vector<128x128xbf16>
    %c0_6 = arith.constant 0 : index
    %c0_7 = arith.constant 0 : index
    %9 = vector.load %arg4[%c0_6, %c0_7] : memref<128x256xbf16, #tpu.memory_space<vmem>>, vector<128x256xbf16>
    %cst_8 = arith.constant dense<0.000000e+00> : vector<128x256xf32>
    %10 = tpu.matmul %8, %9, %cst_8 {dimension_numbers = #tpu.dot_dimension_numbers<[1], [0], [0], [1], [0, 0, 1, 1], [], []>} : vector<128x128xbf16>, vector<128x256xbf16>, vector<128x256xf32> -> vector<128x256xf32>
    %c0_9 = arith.constant 0 : index
    %c0_10 = arith.constant 0 : index
    %11 = vector.load %arg5[%c0_9, %c0_10] : memref<1x256xf32, #tpu.memory_space<vmem>>, vector<1x256xf32>
    %12 = vector.broadcast %11 : vector<1x256xf32> to vector<128x256xf32>
    %13 = arith.addf %10, %12 : vector<128x256xf32>
    %14 = vector.extract_strided_slice %13 {offsets = [0, 0], sizes = [128, 128], strides = [1, 1]} : vector<128x256xf32> to vector<128x128xf32>
    %15 = vector.extract_strided_slice %13 {offsets = [0, 128], sizes = [128, 128], strides = [1, 1]} : vector<128x256xf32> to vector<128x128xf32>
    %16 = arith.extf %0 : vector<128x128xbf16> to vector<128x128xf32>
    %cst_11 = arith.constant 5.000000e-01 : f32
    %17 = vector.broadcast %cst_11 : f32 to vector<128x128xf32>
    %18 = arith.mulf %17, %15 : vector<128x128xf32>
    %19 = math.exp %18 : vector<128x128xf32>
    %20 = arith.mulf %16, %19 : vector<128x128xf32>
    %21 = arith.addf %14, %20 : vector<128x128xf32>
    %22 = tpu.iota {dimensions = array<i32: 1>} : vector<128x128xi32>
    %c20_i32 = arith.constant 20 : i32
    %23 = vector.broadcast %c20_i32 : i32 to vector<128x128xi32>
    %24 = arith.cmpi slt, %22, %23 : vector<128x128xi32>
    %cst_12 = arith.constant 0.000000e+00 : f32
    %25 = vector.broadcast %cst_12 : f32 to vector<128x128xf32>
    %26 = arith.select %24, %21, %25 : vector<128x128xi1>, vector<128x128xf32>
    %27 = arith.truncf %26 : vector<128x128xf32> to vector<128x128xbf16>
    %c0_13 = arith.constant 0 : index
    %c0_14 = arith.constant 0 : index
    %28 = vector.load %arg6[%c0_13, %c0_14] : memref<128x128xbf16, #tpu.memory_space<vmem>>, vector<128x128xbf16>
    %cst_15 = arith.constant dense<0.000000e+00> : vector<128x128xf32>
    %29 = tpu.matmul %27, %28, %cst_15 {dimension_numbers = #tpu.dot_dimension_numbers<[1], [0], [0], [1], [0, 0, 1, 1], [], []>} : vector<128x128xbf16>, vector<128x128xbf16>, vector<128x128xf32> -> vector<128x128xf32>
    %c0_16 = arith.constant 0 : index
    %c0_17 = arith.constant 0 : index
    %30 = vector.load %arg7[%c0_16, %c0_17] : memref<1x128xf32, #tpu.memory_space<vmem>>, vector<1x128xf32>
    %31 = vector.broadcast %30 : vector<1x128xf32> to vector<128x128xf32>
    %32 = arith.addf %29, %31 : vector<128x128xf32>
    %cst_18 = arith.constant 0.000000e+00 : f32
    %33 = vector.broadcast %cst_18 : f32 to vector<128x128xf32>
    %34 = arith.maximumf %32, %33 : vector<128x128xf32>
    %35 = arith.truncf %34 : vector<128x128xf32> to vector<128x128xbf16>
    %c0_19 = arith.constant 0 : index
    %c0_20 = arith.constant 0 : index
    %36 = vector.load %arg8[%c0_19, %c0_20] : memref<128x128xbf16, #tpu.memory_space<vmem>>, vector<128x128xbf16>
    %cst_21 = arith.constant dense<0.000000e+00> : vector<128x128xf32>
    %37 = tpu.matmul %35, %36, %cst_21 {dimension_numbers = #tpu.dot_dimension_numbers<[1], [0], [0], [1], [0, 0, 1, 1], [], []>} : vector<128x128xbf16>, vector<128x128xbf16>, vector<128x128xf32> -> vector<128x128xf32>
    %c0_22 = arith.constant 0 : index
    %c0_23 = arith.constant 0 : index
    %38 = vector.load %arg9[%c0_22, %c0_23] : memref<1x128xf32, #tpu.memory_space<vmem>>, vector<1x128xf32>
    %39 = vector.broadcast %38 : vector<1x128xf32> to vector<128x128xf32>
    %40 = arith.addf %37, %39 : vector<128x128xf32>
    %41 = arith.negf %40 : vector<128x128xf32>
    %42 = math.exp %41 : vector<128x128xf32>
    %cst_24 = arith.constant 1.000000e+00 : f32
    %43 = vector.broadcast %cst_24 : f32 to vector<128x128xf32>
    %44 = arith.addf %43, %42 : vector<128x128xf32>
    %45 = arith.divf %43, %44 : vector<128x128xf32>
    %cst_25 = arith.constant 0.000000e+00 : f32
    %46 = vector.broadcast %cst_25 : f32 to vector<128x128xf32>
    %c0_26 = arith.constant 0 : index
    %c0_27 = arith.constant 0 : index
    %47 = vector.load %arg10[%c0_26, %c0_27] : memref<128x128xf32, #tpu.memory_space<vmem>>, vector<128x128xf32>
    tpu.vector_store %arg10[%c0_26, %c0_27], %46 {strides = array<i32>} : memref<128x128xf32, #tpu.memory_space<vmem>>, vector<128x128xf32>,
    %48 = vector.extract_strided_slice %45 {offsets = [0, 0], sizes = [128, 32], strides = [1, 1]} : vector<128x128xf32> to vector<128x32xf32>
    %c0_28 = arith.constant 0 : index
    %c0_29 = arith.constant 0 : index
    %49 = vector.load %arg10[%c0_28, %c0_29] : memref<128x128xf32, #tpu.memory_space<vmem>>, vector<128x32xf32>
    tpu.vector_store %arg10[%c0_28, %c0_29], %48 {strides = array<i32>} : memref<128x128xf32, #tpu.memory_space<vmem>>, vector<128x32xf32>,
    %50 = vector.extract_strided_slice %14 {offsets = [0, 0], sizes = [128, 20], strides = [1, 1]} : vector<128x128xf32> to vector<128x20xf32>
    %c0_30 = arith.constant 0 : index
    %c32 = arith.constant 32 : index
    %51 = vector.load %arg10[%c0_30, %c32] : memref<128x128xf32, #tpu.memory_space<vmem>>, vector<128x20xf32>
    tpu.vector_store %arg10[%c0_30, %c32], %50 {strides = array<i32>} : memref<128x128xf32, #tpu.memory_space<vmem>>, vector<128x20xf32>,
    %52 = vector.extract_strided_slice %15 {offsets = [0, 0], sizes = [128, 20], strides = [1, 1]} : vector<128x128xf32> to vector<128x20xf32>
    %c0_31 = arith.constant 0 : index
    %c52 = arith.constant 52 : index
    %53 = vector.load %arg10[%c0_31, %c52] : memref<128x128xf32, #tpu.memory_space<vmem>>, vector<128x20xf32>
    tpu.vector_store %arg10[%c0_31, %c52], %52 {strides = array<i32>} : memref<128x128xf32, #tpu.memory_space<vmem>>, vector<128x20xf32>,
    return
  }
  func.func @transform_0(%arg0: i32) -> (i32, i32) {
    %c0_i32 = arith.constant 0 : i32
    %c0_i32_0 = arith.constant 0 : i32
    return %arg0, %c0_i32 : i32, i32
  }
  func.func @transform_1(%arg0: i32) -> (i32, i32) {
    %c0_i32 = arith.constant 0 : i32
    %c0_i32_0 = arith.constant 0 : i32
    %c0_i32_1 = arith.constant 0 : i32
    return %c0_i32, %c0_i32_0 : i32, i32
  }
  func.func @transform_2(%arg0: i32) -> (i32, i32) {
    %c0_i32 = arith.constant 0 : i32
    %c0_i32_0 = arith.constant 0 : i32
    %c0_i32_1 = arith.constant 0 : i32
    return %c0_i32, %c0_i32_0 : i32, i32
  }
  func.func @transform_3(%arg0: i32) -> (i32, i32) {
    %c0_i32 = arith.constant 0 : i32
    %c0_i32_0 = arith.constant 0 : i32
    %c0_i32_1 = arith.constant 0 : i32
    return %c0_i32, %c0_i32_0 : i32, i32
  }
  func.func @transform_4(%arg0: i32) -> (i32, i32) {
    %c0_i32 = arith.constant 0 : i32
    %c0_i32_0 = arith.constant 0 : i32
    %c0_i32_1 = arith.constant 0 : i32
    return %c0_i32, %c0_i32_0 : i32, i32
  }
  func.func @transform_5(%arg0: i32) -> (i32, i32) {
    %c0_i32 = arith.constant 0 : i32
    %c0_i32_0 = arith.constant 0 : i32
    %c0_i32_1 = arith.constant 0 : i32
    return %c0_i32, %c0_i32_0 : i32, i32
  }
  func.func @transform_6(%arg0: i32) -> (i32, i32) {
    %c0_i32 = arith.constant 0 : i32
    %c0_i32_0 = arith.constant 0 : i32
    %c0_i32_1 = arith.constant 0 : i32
    return %c0_i32, %c0_i32_0 : i32, i32
  }
  func.func @transform_7(%arg0: i32) -> (i32, i32) {
    %c0_i32 = arith.constant 0 : i32
    %c0_i32_0 = arith.constant 0 : i32
    %c0_i32_1 = arith.constant 0 : i32
    return %c0_i32, %c0_i32_0 : i32, i32
  }
  func.func @transform_8(%arg0: i32) -> (i32, i32) {
    %c0_i32 = arith.constant 0 : i32
    %c0_i32_0 = arith.constant 0 : i32
    %c0_i32_1 = arith.constant 0 : i32
    return %c0_i32, %c0_i32_0 : i32, i32
  }
  func.func @transform_9(%arg0: i32) -> (i32, i32) {
    %c0_i32 = arith.constant 0 : i32
    %c0_i32_0 = arith.constant 0 : i32
    return %arg0, %c0_i32 : i32, i32
  }
}

</mosaic_0001>

<bundles_post_ra>
// kernel: tpu_custom_call.1
= control target key start
LH: loop header
LB: loop body
LE: loop exit
PB: predicated region body
PF: predicated region fallthrough
CT: control target
= control target key end

     0   :  { %s3265_s0 = inlined_call_operand.hbm [shape: bf16[256,128], index: 0, kind: input, shape index: {}]   ;;  %s3266_s1 = inlined_call_operand.hbm [shape: bf16[128,128], index: 1, kind: input, shape index: {}]   ;;  %s3267_s2 = inlined_call_operand.vmem [shape: f32[1,128], index: 2, kind: input, shape index: {}]   ;;  %s3268_s3 = inlined_call_operand.hbm [shape: bf16[128,256], index: 3, kind: input, shape index: {}]   ;;  %s3269_s4 = inlined_call_operand.vmem [shape: f32[1,256], index: 4, kind: input, shape index: {}]   ;;  %s3270_s5 = inlined_call_operand.hbm [shape: bf16[128,128], index: 5, kind: input, shape index: {}]   ;;  %s3271_s6 = inlined_call_operand.vmem [shape: f32[1,128], index: 6, kind: input, shape index: {}]   ;;  %s3272_s7 = inlined_call_operand.hbm [shape: bf16[128,128], index: 7, kind: input, shape index: {}]   ;;  %s3273_s8 = inlined_call_operand.vmem [shape: f32[1,128], index: 8, kind: input, shape index: {}]   ;;  %s3274_s9 = inlined_call_operand.hbm [shape: f32[256,128], index: 9, kind: output, shape index: {}]  }
   0x1   :  { %3285 = sst [smem:[#allocation18_spill]] %s3274_s9 }
   0x2   :  { %14 = vsyncpa [#allocation3], 0 }
   0x3   :  { %16 = vsyncpa [#allocation3 + $0x1], 0 }
   0x4   :  { %17 = vsyncpa [#allocation6], 0 }
   0x5   :  { %18 = vsyncpa [#allocation9], 0 }
   0x6   :  { %19 = vsyncpa [#allocation4], 0 }
   0x7   :  { %21 = vsyncpa [#allocation4 + $0x1], 0  ;;  %s2604_s30 = smov 0   ;;  %s2606_s10 = smov 0  }
   0x8   :  { %s2608_s11 = smov 0   ;;  %s2610_s12 = smov 0  }
   0x9 LB: > { %3286 = sst [smem:[#allocation16_spill]] %s2524_s30  ;;  %s2625_s13 = sadd.s32 4294967295, %s2536_s12   ;;  %s2536_s12 = sphi %s2610_s12, %s3314_s12   ;;  %s2532_s11 = sphi %s2608_s11, %s3313_s11   ;;  %s2528_s10 = sphi %s2606_s10, %s3312_s10   ;;  %s2524_s30 = sphi %s2604_s30, %s3311_s30  }
   0xa   : > { %s1788_s14 = sadd.s32 4294967294, %s2536_s12   ;;  %p47_p0 = scmp.ne.s32.totalorder %s2528_s10, %s2524_s30 }
   0xb   : > { %p3275_p1 = scmp.eq.s32.totalorder %s2625_s13, 0  ;;  %p245_p3 = scmp.eq.s32.totalorder %s1788_s14, 1 }
   0xc   : > { %p1789_p5 = scmp.ge.s32.totalorder %s2536_s12, 1  ;;  %p252_p7 = scmp.lt.s32.totalorder %s2536_s12, 3 }
   0xd   : > { %p2634_p4 = por %p3275_p1, %p47_p0  ;;  %p2639_p6 = por %p245_p3, %p47_p0 }
   0xe   : > { %p2644_p8 = pnand %p1789_p5, %p252_p7  ;;  %s2538_s18 = smov [#allocation5]  }
   0xf   : > { %s3287_s15 = scalar_select %p2634_p4, 1, 0 }
  0x10   : > { %s3288_s16 = scalar_select %p2639_p6, 1, 0 }
  0x11   : > { %s3290_s17 = scalar_select %p2644_p8, 1, 0 }
  0x12   : > { %3289 = sst [smem:[#allocation17_spill]] %s3288_s16  ;;  %s264_s19 = sshll.u32 %s2538_s18, 4  ;;  %s2648_s19 = int_to_ptr.vmem [resolvable:$true] %s264_s19 }
  0x13   : > { %p2083_p9 = pneg %p2644_p8  ;;  %s2539_s21 = smov [#allocation8]  }
  0x14   : > { %s296_s22 = sshll.u32 %s2539_s21, 4  ;;  %s2540_s23 = smov [#allocation7]   ;;  %s2659_s22 = int_to_ptr.vmem [resolvable:$true] %s296_s22 }
  0x15   : > { %p2655_p11 = pnand %p2083_p9, %p3275_p1  ;;  %s2661_s24 = sshll.u32 %s2540_s23, 4  ;;  %s281_s24 = int_to_ptr.vmem [resolvable:$true] %s2661_s24 }
  0x16   : > { %s2320_s27 = scalar_lea.hbm %s3266_s1, 1024 }
  0x17   : > { %p2321_p12 = scmp.ne.s32.totalorder %s3266_s1, %s2320_s27  ;;  %p2671_p13 = pneg %p2655_p11 }
  0x18   : > { %p2327_p5 = scmp.lt.u32.totalorder %s2320_s27, %s3266_s1 }
  0x19   : > { %p2323_p0 = pnand %p2671_p13, %p2321_p12 }
  0x1b   : > { %p2324_p3 = pneg %p2323_p0 }
  0x1d   : > { %p2329_p7 = pnand %p2327_p5, %p2324_p3 }
  0x1f   : > { %2332 = shalt.err (!%p2329_p7)
}
  0x20   : > { %s2333_s23 = scalar_lea.vmem %s2648_s19, 1024  ;;  %p2341_p2 = scmp.lt.s32.totalorder %s2648_s19, %s2648_s19 }
  0x21   : > { %p2334_p9 = scmp.ne.s32.totalorder %s2648_s19, %s2333_s23  ;;  %p2342_p6 = scmp.lt.s32.totalorder %s2333_s23, %s2333_s23 }
  0x23   : > { %p2336_p10 = pnand %p2334_p9, %p2671_p13  ;;  %p2343_p12 = por %p2342_p6, %p2341_p2 }
  0x25   : > { %p2337_p1 = pneg %p2336_p10 }
  0x27   : > { %p2344_p0 = pnand %p2343_p12, %p2337_p1 }
  0x29   : > { %2347 = shalt.err (!%p2344_p0)
}
  0x2a   : > { %s3281_s25 = smov 64   ;;  %s3283_s26 = smov 4  }
  0x2b   : > { %2086 = dma.hbm_to_vmem [thread:$0]  (!%p2655_p11), %s3266_s1, 1024, %s2648_s19, [#allocation6], %s3281_s25, %s3281_s25, %s3283_s26  }
  0x2c   : > { %s2348_s21 = scalar_lea.hbm %s3270_s5, 1024 }
  0x2d   : > { %p2349_p1 = scmp.ne.s32.totalorder %s3270_s5, %s2348_s21  ;;  %p2355_p10 = scmp.lt.u32.totalorder %s2348_s21, %s3270_s5 }
  0x2f   : > { %p2351_p2 = pnand %p2349_p1, %p2671_p13 }
  0x31   : > { %p2352_p6 = pneg %p2351_p2 }
  0x33   : > { %p2357_p3 = pnand %p2355_p10, %p2352_p6 }
  0x35   : > { %2360 = shalt.err (!%p2357_p3)
}
  0x36   : > { %s2361_s19 = scalar_lea.vmem %s2659_s22, 1024  ;;  %p2369_p12 = scmp.lt.s32.totalorder %s2659_s22, %s2659_s22 }
  0x37   : > { %p2362_p5 = scmp.ne.s32.totalorder %s2659_s22, %s2361_s19  ;;  %p2370_p0 = scmp.lt.s32.totalorder %s2361_s19, %s2361_s19 }
  0x39   : > { %p2364_p7 = pnand %p2362_p5, %p2671_p13  ;;  %p2371_p1 = por %p2370_p0, %p2369_p12 }
  0x3b   : > { %p2365_p9 = pneg %p2364_p7 }
  0x3d   : > { %p2372_p2 = pnand %p2371_p1, %p2365_p9 }
  0x3f   : > { %2375 = shalt.err (!%p2372_p2)
}
  0x40   : > { %2092 = dma.hbm_to_vmem [thread:$0]  (!%p2655_p11), %s3270_s5, 1024, %s2659_s22, [#allocation9], %s3281_s25, %s3281_s25, %s3283_s26  }
  0x41   : > { %s2376_s28 = scalar_lea.hbm %s3268_s3, 2048 }
  0x42   : > { %p2377_p6 = scmp.ne.s32.totalorder %s3268_s3, %s2376_s28  ;;  %p2383_p5 = scmp.lt.u32.totalorder %s2376_s28, %s3268_s3 }
  0x44   : > { %p2379_p10 = pnand %p2377_p6, %p2671_p13 }
  0x46   : > { %p2380_p3 = pneg %p2379_p10 }
  0x48   : > { %p2385_p7 = pnand %p2383_p5, %p2380_p3 }
  0x4a   : > { %2388 = shalt.err (!%p2385_p7)
}
  0x4b   : > { %s2389_s19 = scalar_lea.vmem %s281_s24, 2048  ;;  %p2397_p1 = scmp.lt.s32.totalorder %s281_s24, %s281_s24 }
  0x4c   : > { %p2390_p9 = scmp.ne.s32.totalorder %s281_s24, %s2389_s19  ;;  %p2398_p2 = scmp.lt.s32.totalorder %s2389_s19, %s2389_s19 }
  0x4e   : > { %p2392_p12 = pnand %p2390_p9, %p2671_p13  ;;  %p2399_p4 = por %p2398_p2, %p2397_p1 }
  0x50   : > { %p2393_p0 = pneg %p2392_p12 }
  0x52   : > { %p2400_p8 = pnand %p2399_p4, %p2393_p0 }
  0x54   : > { %2403 = shalt.err (!%p2400_p8)
}
  0x55   : > { %s2543_s22 = smov 128   ;;  %s2544_s9 = smov 8  }
  0x56   : > { %2089 = dma.hbm_to_vmem [thread:$0]  (!%p2655_p11), %s3268_s3, 2048, %s281_s24, [#allocation6], %s2543_s22, %s2543_s22, %s2544_s9  }
  0x57   : > { %s2545_s27 = smov [#allocation10]   ;;  %s2404_s21 = scalar_lea.hbm %s3272_s7, 1024 }
  0x58   : > { %s312_s28 = sshll.u32 %s2545_s27, 4  ;;  %p2405_p4 = scmp.ne.s32.totalorder %s3272_s7, %s2404_s21  ;;  %s313_s28 = int_to_ptr.vmem [resolvable:$true] %s312_s28 }
  0x59   : > { %p2411_p10 = scmp.lt.u32.totalorder %s2404_s21, %s3272_s7 }
  0x5a   : > { %p2407_p8 = pnand %p2405_p4, %p2671_p13 }
  0x5c   : > { %p2408_p6 = pneg %p2407_p8 }
  0x5e   : > { %p2413_p3 = pnand %p2411_p10, %p2408_p6 }
  0x60   : > { %2416 = shalt.err (!%p2413_p3)
}
  0x61   : > { %s2417_s24 = scalar_lea.vmem %s313_s28, 1024  ;;  %p2425_p12 = scmp.lt.s32.totalorder %s313_s28, %s313_s28 }
  0x62   : > { %p2418_p5 = scmp.ne.s32.totalorder %s313_s28, %s2417_s24  ;;  %p2426_p0 = scmp.lt.s32.totalorder %s2417_s24, %s2417_s24 }
  0x64   : > { %p2420_p7 = pnand %p2418_p5, %p2671_p13  ;;  %p2427_p1 = por %p2426_p0, %p2425_p12 }
  0x66   : > { %p2421_p9 = pneg %p2420_p7 }
  0x68   : > { %p2428_p2 = pnand %p2427_p1, %p2421_p9 }
  0x6a   : > { %2431 = shalt.err (!%p2428_p2)
}
  0x6b   : > { %s3293_s22 = smov 4   ;;  %s3294_s9 = smov 64  }
  0x6c   : > { %2095 = dma.hbm_to_vmem [thread:$0]  (!%p2655_p11), %s3272_s7, 1024, %s313_s28, [#allocation9], %s3294_s9, %s3294_s9, %s3293_s22  }
  0x6d   : > { %s2762_s14 = sadd.s32 1, %s2536_s12   ;;  %s34_s20 = sadd.s32 1, %s2532_s11 }
  0x6e   : > { %s31_s30 = ssub.s32 %s2536_s12, %s2762_s14  ;;  %p41_p13 = scmp.ne.s32.totalorder %s2532_s11, %s2528_s10 }
  0x6f   : > { %p32_p4 = scmp.eq.s32.totalorder %s31_s30, 0  ;;  %p42_p8 = scmp.eq.s32.totalorder %s2536_s12, 0 }
  0x70   : > { %p3295_p6 = scmp.eq.s32.totalorder %s2625_s13, 1  ;;  %p2108_p3 = scmp.lt.s32.totalorder %s2536_s12, 2 }
  0x71   : > { %s2778_s27 = scalar_select %p32_p4, %s2532_s11, %s34_s20  }
  0x72   : > { %p2772_p10 = por %p3295_p6, %p41_p13  ;;  %p43_p5 = por %p42_p8, %p41_p13 }
  0x73   : > { %s329_s29 = sand.u32 1, %s2532_s11   ;;  %s1901_s28 = sshll.u32 %s2536_s12, 10 }
  0x74   : > { %s1795_s18 = sshll.u32 %s329_s29, 6  ;;  %s2785_s19 = scalar_lea.hbm %s3265_s0, %s1901_s28 }
  0x75   : > { %s333_s24 = scalar_lea.vmem [#allocation2], %s1795_s18  ;;  %p2789_p11 = pnand %p2108_p3, %p43_p5 }
  0x76   : > { %s340_s25 = sshll.u32 %s333_s24, 4  ;;  %s2793_s20 = scalar_lea.sflag [#allocation3], %s329_s29  ;;  %s2787_s25 = int_to_ptr.vmem [resolvable:$true] %s340_s25 }
  0x77   : > { %s2432_s30 = scalar_lea.hbm %s2785_s19, 1024  ;;  %p2434_p9 = pneg %p2789_p11 }
  0x78   : > { %p2433_p7 = scmp.ne.s32.totalorder %s2785_s19, %s2432_s30  ;;  %s2437_s21 = scalar_lea.hbm %s3265_s0, 2048 }
  0x79   : > { %p2438_p1 = scmp.lt.u32.totalorder %s2785_s19, %s3265_s0  ;;  %p2439_p2 = scmp.lt.u32.totalorder %s2437_s21, %s2432_s30 }
  0x7a   : > { %p2435_p12 = pnand %p2434_p9, %p2433_p7  ;;  %p2441_p4 = scmp.lt.u32.totalorder %s2432_s30, %s2785_s19 }
  0x7b   : > { %p2440_p13 = por %p2439_p2, %p2438_p1 }
  0x7c   : > { %p2436_p0 = pneg %p2435_p12 }
  0x7d   : > { %p2442_p8 = por %p2441_p4, %p2440_p13 }
  0x7f   : > { %p2443_p6 = pnand %p2442_p8, %p2436_p0 }
  0x81   : > { %2446 = shalt.err (!%p2443_p6)
}
  0x82   : > { %s2447_s29 = scalar_lea.vmem %s2787_s25, 1024  ;;  %s2546_s18 = smov [#allocation2]  }
  0x83   : > { %p2448_p3 = scmp.ne.s32.totalorder %s2787_s25, %s2447_s29  ;;  %s2452_s28 = sshll.u32 %s2546_s18, 4  ;;  %s2453_s28 = int_to_ptr.vmem [resolvable:$false] %s2452_s28 }
  0x84   : > { %s2454_s23 = scalar_lea.vmem %s2453_s28, 2048  ;;  %p2455_p12 = scmp.lt.s32.totalorder %s2787_s25, %s2453_s28 }
  0x85   : > { %p2450_p5 = pnand %p2448_p3, %p2434_p9  ;;  %p2456_p1 = scmp.lt.s32.totalorder %s2454_s23, %s2447_s29 }
  0x87   : > { %p2451_p7 = pneg %p2450_p5  ;;  %p2457_p2 = por %p2456_p1, %p2455_p12 }
  0x89   : > { %p2458_p13 = pnand %p2457_p2, %p2451_p7 }
  0x8b   : > { %2461 = shalt.err (!%p2458_p13)
}
  0x8c   : > { %2099 = dma.hbm_to_vmem [thread:$0]  (!%p2789_p11), %s2785_s19, 1024, %s2787_s25, %s2793_s20, %s3294_s9, %s3294_s9, %s3293_s22  }
  0x8d   : > { %p3298_p9 = scmp.ne.s32.totalorder %s3290_s17, 0 }
  0x8e   : > { %s2827_s30 = sand.u32 (!%p3298_p9), 1, %s2528_s10   ;;  %p3299_p0 = scmp.ne.s32.totalorder (!%p3298_p9), %s3287_s15, 0 }
  0x8f   : > { %352 = sbr.rel (%p3298_p9) target bundleno = 1195 (0x4ab), region = 56  ;;  %s1799_s21 = sshll.u32 (!%p3298_p9), %s2827_s30, 6 }
  0x90   : > { %s355_s24 = scalar_lea.sflag (!%p3298_p9), [#allocation3], %s2827_s30  ;;  %s2831_s29 = scalar_lea.vmem (!%p3298_p9), [#allocation2], %s1799_s21 }
  0x96   : > { %2507 = dma.done.wait (%p3299_p0), %s355_s24, 1024  }
  0x97   : > { %2509 = vsyncadd (%p3299_p0), %s355_s24, 4294966272  ;;  %p3300_p11 = scmp.eq.s32.totalorder %s2625_s13, 0 }
  0x99   : > { %2511 = dma.done.wait (%p3300_p11), [#allocation6], 3072   ;;  %p3301_p4 = pmov %p3300_p11 }
  0x9b   : > { %2513 = vsyncadd (%p3301_p4), [#allocation6], 4294964224  ;;  %p3302_p8 = pmov %p3301_p4 }
  0x9c   : > { %p3303_p6 = pmov %p3301_p4 }
  0x9d   : > { %2515 = dma.done.wait (%p3302_p8), [#allocation9], 2048  }
  0x9e   : > { %2517 = vsyncadd (%p3303_p6), [#allocation9], 4294965248  ;;  %v2160_v0 = vld [vmem:[#allocation5] sm:$0xff]   ;;  %v2161_v1 = vld [vmem:[#allocation5 + $0x8] sm:$0xff]   ;;  %v2547_v32 = vmov 0   ;;  %s2548_s19 = smov 32  }
  0x9f   : > { %1951 = vmatprep.subr.bf16.mxu0 %v2160_v0  ;;  %v2162_v2 = vld [vmem:[#allocation5 + $0x10] sm:$0xff]   ;;  %v2163_v3 = vld [vmem:[#allocation5 + $0x18] sm:$0xff]   ;;  %v2846_v4 = vld [vmem:[%s2831_s29] sm:$0xff]   ;;  %808 = vmatprep.mubr.bf16.mxu1 %v2547_v32  ;;  %s2549_s25 = smov 52   ;;  %s1804_s18 = sshll.u32 %s2827_s30, 7  ;;  %vm1484_vm2 = vcmask 261120  }
  0xa0   : > { %1952 = vmatpush3.bf16.msra.mxu0 %v2160_v0  ;;  %v2164_v5 = vld [vmem:[#allocation5 + $0x20] sm:$0xff]   ;;  %1967 = vmatprep.mubr.bf16.mxu0 %v2846_v4  ;;  %v2179_v8 = vld [vmem:[#allocation7 + $0x14] ss:$8 sps:$4 sm:$0xff]   ;;  %v2181_v9 = vld [vmem:[#allocation7 + $0x10] ss:$8 sps:$4 sm:$0xff]   ;;  %s3043_s28 = scalar_lea.vmem [#allocation11], %s1804_s18 }
  0xa1   : > { %1953 = vmatprep.subr.bf16.mxu0 %v2161_v1  ;;  %v2176_v6 = vld [vmem:[#allocation7 + $0x4] ss:$8 sps:$4 sm:$0xff]   ;;  %v2178_v7 = vld [vmem:[#allocation7] ss:$8 sps:$4 sm:$0xff]   ;;  %v2166_v12 = vld [vmem:[#allocation5 + $0x30] sm:$0xff]   ;;  %vm1565_vm3 = vcmask 425216  }
  0xa2   : > { %776 = vmatprep.subr.bf16.mxu1 %v2176_v6  ;;  %v2182_v10 = vld [vmem:[#allocation7 + $0x24] ss:$8 sps:$4 sm:$0xff]   ;;  %v2184_v13 = vld [vmem:[#allocation7 + $0x20] ss:$8 sps:$4 sm:$0xff]   ;;  %v2185_v14 = vld [vmem:[#allocation7 + $0x34] ss:$8 sps:$4 sm:$0xff]  }
  0xa3   : > { %777 = vmatpush1.bf16.msra.mxu1 %v2178_v7  ;;  %v2165_v11 = vld [vmem:[#allocation5 + $0x28] sm:$0xff]   ;;  %v2187_v15 = vld [vmem:[#allocation7 + $0x30] ss:$8 sps:$4 sm:$0xff]   ;;  %v2191_v20 = vld [vmem:[#allocation7 + $0x54] ss:$8 sps:$4 sm:$0xff]   ;;  %vm1646_vm4 = vcmask 589216  }
  0xa4   : > { %1954 = vmatpush3.bf16.msra.mxu0 %v2161_v1  ;;  %778 = vmatprep.subr.bf16.mxu1 %v2179_v8  ;;  %v2188_v16 = vld [vmem:[#allocation7 + $0x44] ss:$8 sps:$4 sm:$0xff]   ;;  %v2167_v17 = vld [vmem:[#allocation5 + $0x38] sm:$0xff]   ;;  %v2190_v18 = vld [vmem:[#allocation7 + $0x40] ss:$8 sps:$4 sm:$0xff]   ;;  %s1902_s24 = sshll.u32 %s2625_s13, 11 }
  0xa5   : > { %1955 = vmatprep.subr.bf16.mxu0 %v2162_v2  ;;  %v2850_v19 = vld [vmem:[%s2831_s29 + $0x8] sm:$0xff]   ;;  %v2853_v21 = vld [vmem:[%s2831_s29 + $0x10] sm:$0xff]   ;;  %v2858_v23 = vld [vmem:[%s2831_s29 + $0x18] sm:$0xff]   ;;  %s3306_s17 = sld [smem:[#allocation18_spill]]  ;;  %s1664_s9 = scalar_lea.sflag [#allocation4], %s2827_s30 }
  0xa6   : > { %v2193_v22 = vld [vmem:[#allocation7 + $0x50] ss:$8 sps:$4 sm:$0xff]   ;;  %v2861_v24 = vld [vmem:[%s2831_s29 + $0x20] sm:$0xff]   ;;  %v2866_v25 = vld [vmem:[%s2831_s29 + $0x28] sm:$0xff]  }
  0xa7   : > { %779 = vmatpush1.bf16.msra.mxu1 %v2181_v9  ;;  %v2869_v26 = vld [vmem:[%s2831_s29 + $0x30] sm:$0xff]   ;;  %v2874_v27 = vld [vmem:[%s2831_s29 + $0x38] sm:$0xff]   ;;  %v2194_v28 = vld [vmem:[#allocation7 + $0x64] ss:$8 sps:$4 sm:$0xff]   ;;  %s1677_s29 = sshll.u32 %s3043_s28, 4  ;;  %s3209_s29 = int_to_ptr.vmem [resolvable:$true] %s1677_s29 }
  0xa8   : > { %1956 = vmatpush3.bf16.msra.mxu0 %v2162_v2  ;;  %780 = vmatprep.subr.bf16.mxu1 %v2182_v10  ;;  %v2196_v29 = vld [vmem:[#allocation7 + $0x60] ss:$8 sps:$4 sm:$0xff]   ;;  %v2197_v30 = vld [vmem:[#allocation7 + $0x74] ss:$8 sps:$4 sm:$0xff]   ;;  %v2199_v31 = vld [vmem:[#allocation7 + $0x70] ss:$8 sps:$4 sm:$0xff]  }
  0xa9   : > { %1957 = vmatprep.subr.bf16.mxu0 %v2163_v3  ;;  %v1805_v33 = vld [vmem:[%s3267_s2] ss:$0 sm:$0xff] }
  0xab   : > { %781 = vmatpush1.bf16.msra.mxu1 %v2184_v13  ;;  %s3207_s22 = scalar_lea.hbm %s3306_s17, %s1902_s24 }
  0xac   : > { %1958 = vmatpush3.bf16.msra.mxu0 %v2163_v3  ;;  %782 = vmatprep.subr.bf16.mxu1 %v2185_v14 }
  0xad   : > { %1959 = vmatprep.subr.bf16.mxu0 %v2164_v5 }
  0xaf   : > { %783 = vmatpush1.bf16.msra.mxu1 %v2187_v15 }
  0xb0   : > { %1960 = vmatpush3.bf16.msra.mxu0 %v2164_v5  ;;  %784 = vmatprep.subr.bf16.mxu1 %v2188_v16 }
  0xb1   : > { %1961 = vmatprep.subr.bf16.mxu0 %v2165_v11 }
  0xb3   : > { %785 = vmatpush1.bf16.msra.mxu1 %v2190_v18 }
  0xb4   : > { %1962 = vmatpush3.bf16.msra.mxu0 %v2165_v11  ;;  %786 = vmatprep.subr.bf16.mxu1 %v2191_v20 }
  0xb5   : > { %1963 = vmatprep.subr.bf16.mxu0 %v2166_v12 }
  0xb7   : > { %787 = vmatpush1.bf16.msra.mxu1 %v2193_v22 }
  0xb8   : > { %1964 = vmatpush3.bf16.msra.mxu0 %v2166_v12  ;;  %788 = vmatprep.subr.bf16.mxu1 %v2194_v28 }
  0xb9   : > { %1965 = vmatprep.subr.bf16.mxu0 %v2167_v17 }
  0xbb   : > { %789 = vmatpush1.bf16.msra.mxu1 %v2196_v29 }
  0xbc   : > { %1966 = vmatpush3.bf16.msra.mxu0 %v2167_v17  ;;  %790 = vmatprep.subr.bf16.mxu1 %v2197_v30 }
  0xbf   : > { %1968 = vmatmul.mubr.bf16.vlgmr.msra.gmra.mrb[0].mxu0 %v2850_v19  ;;  %791 = vmatpush1.bf16.msra.mxu1 %v2199_v31 }
  0xc0   : > { %1971 = vmatprep.mubr.bf16.mxu0 %v2853_v21 }
  0xc7   : > { %1972 = vmatmul.mubr.bf16.gmra.mrb[4].mxu0 %v2858_v23 }
  0xc8   : > { %1975 = vmatprep.mubr.bf16.mxu0 %v2861_v24 }
  0xcf   : > { %1976 = vmatmul.mubr.bf16.gmra.mrb[8].mxu0 %v2866_v25 }
  0xd0   : > { %1979 = vmatprep.mubr.bf16.mxu0 %v2869_v26 }
  0xd7   : > { %1980 = vmatmul.mubr.bf16.gmra.mrb[12].mxu0 %v2874_v27 }
 0x192   : > { %v1969_v34 = vpop.f32.mrb[0].mxu0 }
 0x193   : > { %v590_v35 = vadd.f32 %v1969_v34, %v1805_v33  ;;  %v581_v36 = vpop.f32.mrb[1].mxu0 }
 0x194   : > { %v582_v37 = vadd.f32 %v1805_v33, %v581_v36  ;;  %v1970_v38 = vpop.f32.mrb[2].mxu0  ;;  %v2200_v36 = vld [vmem:[#allocation8] sm:$0xff]  }
 0x195   : > { %v593_v39 = vadd.f32 %v1970_v38, %v1805_v33  ;;  %v584_v40 = vpop.f32.mrb[3].mxu0  ;;  %v646_v42 = vmax.f32 %v590_v35, 0.0  ;;  %1983 = vmatprep.subr.bf16.mxu0 %v2200_v36  ;;  %v2203_v38 = vld [vmem:[#allocation8 + $0x18] sm:$0xff]  }
 0x196   : > { %v585_v41 = vadd.f32 %v1805_v33, %v584_v40  ;;  %v644_v44 = vmax.f32 %v582_v37, 0.0  ;;  %1984 = vmatpush3.bf16.msra.mxu0 %v2200_v36  ;;  %v2202_v37 = vld [vmem:[#allocation8 + $0x10] sm:$0xff]   ;;  %v2205_v40 = vld [vmem:[#allocation8 + $0x28] sm:$0xff]  }
 0x197   : > { %v647_v43 = vmax.f32 %v593_v39, 0.0  ;;  %v2204_v39 = vld [vmem:[#allocation8 + $0x20] sm:$0xff]  }
 0x198   : > { %v645_v45 = vmax.f32 %v585_v41, 0.0  ;;  %v2207_v41 = vld [vmem:[#allocation8 + $0x38] sm:$0xff]  }
 0x199   : > { %v661_v46 = vpack.c.bf16 %v647_v43, %v646_v42  ;;  %v686_v42 = vlaneseq }
 0x19a   : > { %v660_v47 = vpack.c.bf16 %v645_v45, %v644_v44  ;;  %v1973_v48 = vpop.f32.mrb[4].mxu0  ;;  %v684_v45 = vld [vmem:[%s3269_s4] sm:$0x3] }
 0x19b   : > { %v606_v49 = vadd.f32 %v1973_v48, %v1805_v33  ;;  %v597_v50 = vpop.f32.mrb[5].mxu0  ;;  %v687_v43 = vshrl.u32 %v686_v42, 7 }
 0x19c   : > { %809 = vmatmul.mubr.bf16.vlgmr.msra.gmra.mrb[0].mxu1 %v660_v47  ;;  %v598_v51 = vadd.f32 %v1805_v33, %v597_v50  ;;  %v1974_v52 = vpop.f32.mrb[6].mxu0 }
 0x19d   : > { %v650_v53 = vmax.f32 %v606_v49, 0.0  ;;  %v609_v54 = vadd.f32 %v1974_v52, %v1805_v33  ;;  %v600_v55 = vpop.f32.mrb[7].mxu0  ;;  %818 = vmatprep.mubr.bf16.mxu1 %v2547_v32  ;;  %v688_v44 = vsub.s32 0, %v687_v43 }
 0x19e   : > { %v648_v56 = vmax.f32 %v598_v51, 0.0  ;;  %v601_v57 = vadd.f32 %v1805_v33, %v600_v55 }
 0x19f   : > { %v651_v58 = vmax.f32 %v609_v54, 0.0  ;;  %v2891_v47 = vrot.slane %v684_v45, %v688_v44 }
 0x1a0   : > { %v649_v59 = vmax.f32 %v601_v57, 0.0 }
 0x1a1   : > { %v663_v60 = vpack.c.bf16 %v651_v58, %v650_v53 }
 0x1a2   : > { %v662_v61 = vpack.c.bf16 %v649_v59, %v648_v56  ;;  %v1977_v62 = vpop.f32.mrb[8].mxu0 }
 0x1a3   : > { %v622_v63 = vadd.f32 %v1977_v62, %v1805_v33  ;;  %v613_v0 = vpop.f32.mrb[9].mxu0 }
 0x1a4   : > { %819 = vmatmul.mubr.bf16.gmra.mrb[4].mxu1 %v661_v46  ;;  %v614_v1 = vadd.f32 %v1805_v33, %v613_v0  ;;  %v1978_v2 = vpop.f32.mrb[10].mxu0  ;;  %v692_v46 = vsub.s32 1, %v687_v43 }
 0x1a5   : > { %828 = vmatprep.mubr.bf16.mxu1 %v2547_v32  ;;  %v654_v3 = vmax.f32 %v622_v63, 0.0  ;;  %v625_v5 = vadd.f32 %v1978_v2, %v1805_v33  ;;  %v616_v6 = vpop.f32.mrb[11].mxu0 }
 0x1a6   : > { %v652_v7 = vmax.f32 %v614_v1, 0.0  ;;  %v617_v8 = vadd.f32 %v1805_v33, %v616_v6  ;;  %v2893_v48 = vrot.slane %v684_v45, %v692_v46 }
 0x1a7   : > { %v655_v9 = vmax.f32 %v625_v5, 0.0 }
 0x1a8   : > { %v653_v10 = vmax.f32 %v617_v8, 0.0 }
 0x1a9   : > { %v665_v11 = vpack.c.bf16 %v655_v9, %v654_v3  ;;  %v889_v9 = vunpack.c.l.bf16 %v2846_v4 }
 0x1aa   : > { %v664_v12 = vpack.c.bf16 %v653_v10, %v652_v7  ;;  %v1981_v13 = vpop.f32.mrb[12].mxu0 }
 0x1ab   : > { %v638_v14 = vadd.f32 %v1981_v13, %v1805_v33  ;;  %v629_v15 = vpop.f32.mrb[13].mxu0 }
 0x1ac   : > { %829 = vmatmul.mubr.bf16.gmra.mrb[8].mxu1 %v662_v61  ;;  %v630_v16 = vadd.f32 %v1805_v33, %v629_v15  ;;  %v1982_v17 = vpop.f32.mrb[14].mxu0 }
 0x1ad   : > { %838 = vmatprep.mubr.bf16.mxu1 %v2547_v32  ;;  %v658_v18 = vmax.f32 %v638_v14, 0.0  ;;  %v641_v20 = vadd.f32 %v1982_v17, %v1805_v33  ;;  %v632_v22 = vpop.f32.mrb[15].mxu0 }
 0x1ae   : > { %v656_v28 = vmax.f32 %v630_v16, 0.0  ;;  %v633_v29 = vadd.f32 %v1805_v33, %v632_v22  ;;  %v2201_v33 = vld [vmem:[#allocation8 + $0x8] sm:$0xff]  }
 0x1af   : > { %v659_v30 = vmax.f32 %v641_v20, 0.0  ;;  %1985 = vmatprep.subr.bf16.mxu0 %v2201_v33 }
 0x1b0   : > { %v657_v31 = vmax.f32 %v633_v29, 0.0  ;;  %1986 = vmatpush3.bf16.msra.mxu0 %v2201_v33  ;;  %v891_v33 = vunpack.c.l.bf16 %v2850_v19 }
 0x1b1   : > { %v667_v34 = vpack.c.bf16 %v659_v30, %v658_v18  ;;  %1987 = vmatprep.subr.bf16.mxu0 %v2202_v37  ;;  %v986_v18 = vand.u32 127, %v686_v42 }
 0x1b2   : > { %v666_v35 = vpack.c.bf16 %v657_v31, %v656_v28 }
 0x1b3   : > { %vm987_vm0 = vcmp.lt.s32.totalorder %v986_v18, 20 }
 0x1b4   : > { %839 = vmatmul.mubr.bf16.gmra.mrb[12].mxu1 %v663_v60  ;;  %1988 = vmatpush3.bf16.msra.mxu0 %v2202_v37  ;;  %vm2934_vm1 = vmpackc.low %vm987_vm0, %vm987_vm0 }
 0x1b5   : > { %848 = vmatprep.mubr.bf16.mxu1 %v2547_v32  ;;  %1989 = vmatprep.subr.bf16.mxu0 %v2203_v38 }
 0x1b8   : > { %1990 = vmatpush3.bf16.msra.mxu0 %v2203_v38 }
 0x1b9   : > { %1991 = vmatprep.subr.bf16.mxu0 %v2204_v39 }
 0x1bc   : > { %849 = vmatmul.mubr.bf16.gmra.mrb[16].mxu1 %v664_v12  ;;  %1992 = vmatpush3.bf16.msra.mxu0 %v2204_v39  ;;  %v890_v12 = vunpack.c.h.bf16 %v2846_v4 }
 0x1bd   : > { %858 = vmatprep.mubr.bf16.mxu1 %v2547_v32  ;;  %1993 = vmatprep.subr.bf16.mxu0 %v2205_v40 }
 0x1c0   : > { %1994 = vmatpush3.bf16.msra.mxu0 %v2205_v40  ;;  %v892_v40 = vunpack.c.h.bf16 %v2850_v19 }
 0x1c4   : > { %859 = vmatmul.mubr.bf16.gmra.mrb[20].mxu1 %v665_v11 }
 0x1c5   : > { %868 = vmatprep.mubr.bf16.mxu1 %v2547_v32 }
 0x1cc   : > { %869 = vmatmul.mubr.bf16.gmra.mrb[24].mxu1 %v666_v35 }
 0x1cd   : > { %878 = vmatprep.mubr.bf16.mxu1 %v2547_v32  ;;  %v2206_v32 = vld [vmem:[#allocation8 + $0x30] sm:$0xff]  }
 0x1ce   : > { %1995 = vmatprep.subr.bf16.mxu0 %v2206_v32 }
 0x1cf   : > { %1996 = vmatpush3.bf16.msra.mxu0 %v2206_v32 }
 0x1d0   : > { %1997 = vmatprep.subr.bf16.mxu0 %v2207_v41 }
 0x1d3   : > { %1998 = vmatpush3.bf16.msra.mxu0 %v2207_v41 }
 0x1d4   : > { %879 = vmatmul.mubr.bf16.gmra.mrb[28].mxu1 %v667_v34 }
 0x26f   : > { %v810_v49 = vpop.f32.mrb[0].mxu1 }
 0x270   : > { %v811_v50 = vadd.f32 %v810_v49, %v2891_v47  ;;  %v812_v51 = vpop.f32.mrb[1].mxu1 }
 0x271   : > { %v813_v52 = vadd.f32 %v812_v51, %v2893_v48  ;;  %v814_v53 = vpop.f32.mrb[2].mxu1 }
 0x272   : > { %v816_v54 = vpop.f32.mrb[3].mxu1  ;;  %1517 = vrot.lane.b32.xlu0 %v811_v50, %s2548_s19  ;;  %v815_v61 = vadd.f32 %v814_v53, %v2891_v47 }
 0x273   : > { %v905_v55 = vmul.f32 0.5, %v813_v52  ;;  %v817_v56 = vadd.f32 %v816_v54, %v2893_v48 }
 0x275   : > { %v921_v57 = vmul.f32 1.442695, %v905_v55  ;;  %v906_v58 = vmul.f32 0.5, %v817_v56  ;;  %1600 = vrot.lane.b32.xlu1 %v817_v56, %s2549_s25 }
 0x276   : > { %1598 = vrot.lane.b32.xlu0 %v813_v52, %s2549_s25 }
 0x277   : > { %2224 = vpow2.f32 %v921_v57  ;;  %v923_v59 = vmul.f32 1.442695, %v906_v58  ;;  %v820_v60 = vpop.f32.mrb[4].mxu1  ;;  %v893_v58 = vunpack.c.l.bf16 %v2853_v21 }
 0x278   : > { %v2903_v62 = vadd.f32 %v820_v60, %v2891_v47  ;;  %v822_v63 = vpop.f32.mrb[5].mxu1 }
 0x279   : > { %2226 = vpow2.f32 %v923_v59  ;;  %v823_v0 = vadd.f32 %v822_v63, %v2893_v48  ;;  %v824_v1 = vpop.f32.mrb[6].mxu1  ;;  %v894_v63 = vunpack.c.h.bf16 %v2853_v21 }
 0x27a   : > { %v826_v2 = vpop.f32.mrb[7].mxu1  ;;  %1521 = vrot.lane.b32.xlu1 %v2903_v62, %s2548_s19  ;;  %1519 = vrot.lane.b32.xlu0 %v815_v61, %s2548_s19  ;;  %v825_v6 = vadd.f32 %v824_v1, %v2891_v47 }
 0x27b   : > { %v907_v3 = vmul.f32 0.5, %v823_v0  ;;  %v827_v5 = vadd.f32 %v826_v2, %v2893_v48 }
 0x27d   : > { %v925_v7 = vmul.f32 1.442695, %v907_v3  ;;  %v908_v8 = vmul.f32 0.5, %v827_v5 }
 0x27e   : > { %1523 = vrot.lane.b32.xlu1 %v825_v6, %s2548_s19  ;;  %1602 = vrot.lane.b32.xlu0 %v823_v0, %s2549_s25 }
 0x27f   : > { %2228 = vpow2.f32 %v925_v7  ;;  %v927_v10 = vmul.f32 1.442695, %v908_v8  ;;  %v830_v11 = vpop.f32.mrb[8].mxu1 }
 0x280   : > { %v2916_v13 = vadd.f32 %v830_v11, %v2891_v47  ;;  %v832_v14 = vpop.f32.mrb[9].mxu1 }
 0x281   : > { %v2225_v15 = vpop.eup %2224  ;;  %2230 = vpow2.f32 %v927_v10  ;;  %v833_v16 = vadd.f32 %v832_v14, %v2893_v48  ;;  %v834_v17 = vpop.f32.mrb[10].mxu1 }
 0x282   : > { %v836_v20 = vpop.f32.mrb[11].mxu1  ;;  %1604 = vrot.lane.b32.xlu1 %v827_v5, %s2549_s25  ;;  %1525 = vrot.lane.b32.xlu0 %v2916_v13, %s2548_s19  ;;  %v953_v22 = vmul.f32 %v2225_v15, %v889_v9  ;;  %v2924_v30 = vadd.f32 %v834_v17, %v2891_v47 }
 0x283   : > { %v2227_v28 = vpop.eup %2226  ;;  %v909_v29 = vmul.f32 0.5, %v833_v16  ;;  %v837_v4 = vadd.f32 %v836_v20, %v2893_v48 }
 0x284   : > { %v954_v31 = vmul.f32 %v2227_v28, %v890_v12  ;;  %v969_v34 = vadd.f32 %v953_v22, %v811_v50  ;;  %v896_v22 = vunpack.c.h.bf16 %v2858_v23 }
 0x285   : > { %v929_v35 = vmul.f32 1.442695, %v909_v29  ;;  %v910_v36 = vmul.f32 0.5, %v837_v4 }
 0x286   : > { %1527 = vrot.lane.b32.xlu1 %v2924_v30, %s2548_s19  ;;  %1606 = vrot.lane.b32.xlu0 %v833_v16, %s2549_s25  ;;  %v970_v37 = vadd.f32 %v954_v31, %v815_v61  ;;  %v895_v16 = vunpack.c.l.bf16 %v2858_v23 }
 0x287   : > { %2232 = vpow2.f32 %v929_v35  ;;  %v931_v38 = vmul.f32 1.442695, %v910_v36  ;;  %v840_v39 = vpop.f32.mrb[12].mxu1 }
 0x288   : > { %v2932_v32 = vadd.f32 %v840_v39, %v2891_v47  ;;  %v842_v41 = vpop.f32.mrb[13].mxu1  ;;  %v1848_v43 = vpack.c.bf16 %v970_v37, %v969_v34 }
 0x289   : > { %v2229_v44 = vpop.eup %2228  ;;  %2234 = vpow2.f32 %v931_v38  ;;  %v843_v45 = vadd.f32 %v842_v41, %v2893_v48  ;;  %v844_v46 = vpop.f32.mrb[14].mxu1 }
 0x28a   : > { %v955_v49 = vmul.f32 %v2229_v44, %v891_v33  ;;  %v846_v50 = vpop.f32.mrb[15].mxu1  ;;  %1608 = vrot.lane.b32.xlu1 %v837_v4, %s2549_s25  ;;  %1529 = vrot.lane.b32.xlu0 %v2932_v32, %s2548_s19  ;;  %v845_v55 = vadd.f32 %v844_v46, %v2891_v47 }
 0x28b   : > { %v2231_v19 = vpop.eup %2230  ;;  %v911_v51 = vmul.f32 0.5, %v843_v45  ;;  %v847_v52 = vadd.f32 %v846_v50, %v2893_v48  ;;  %1999 = vmatprep.mubr.msk.bf16.mxu0 %vm2934_vm1, %v1848_v43  ;;  %v897_v43 = vunpack.c.l.bf16 %v2861_v24 }
 0x28c   : > { %v971_v53 = vadd.f32 %v955_v49, %v2903_v62  ;;  %v956_v54 = vmul.f32 %v2231_v19, %v892_v40  ;;  %v898_v49 = vunpack.c.h.bf16 %v2861_v24 }
 0x28d   : > { %v933_v56 = vmul.f32 1.442695, %v911_v51  ;;  %v912_v57 = vmul.f32 0.5, %v847_v52 }
 0x28e   : > { %v972_v59 = vadd.f32 %v956_v54, %v825_v6  ;;  %1531 = vrot.lane.b32.xlu1 %v845_v55, %s2548_s19  ;;  %1610 = vrot.lane.b32.xlu0 %v843_v45, %s2549_s25 }
 0x28f   : > { %2236 = vpow2.f32 %v933_v56  ;;  %v935_v60 = vmul.f32 1.442695, %v912_v57  ;;  %v850_v61 = vpop.f32.mrb[16].mxu1 }
 0x290   : > { %v2952_v0 = vadd.f32 %v850_v61, %v2891_v47  ;;  %v852_v62 = vpop.f32.mrb[17].mxu1  ;;  %v1851_v1 = vpack.c.bf16 %v972_v59, %v971_v53  ;;  %v2208_v61 = vld [vmem:[#allocation10] sm:$0xff]  }
 0x291   : > { %v2233_v2 = vpop.eup %2232  ;;  %2238 = vpow2.f32 %v935_v60  ;;  %v853_v3 = vadd.f32 %v852_v62, %v2893_v48  ;;  %v854_v5 = vpop.f32.mrb[18].mxu1  ;;  %2015 = vmatprep.subr.bf16.mxu0 %v2208_v61  ;;  %2047 = vmatprep.subr.bf16.mxu1 %v2208_v61 }
 0x292   : > { %v856_v6 = vpop.f32.mrb[19].mxu1  ;;  %1612 = vrot.lane.b32.xlu1 %v847_v52, %s2549_s25  ;;  %1533 = vrot.lane.b32.xlu0 %v2952_v0, %s2548_s19  ;;  %v957_v7 = vmul.f32 %v2233_v2, %v893_v58  ;;  %v2962_v10 = vadd.f32 %v854_v5, %v2891_v47  ;;  %v899_v2 = vunpack.c.l.bf16 %v2866_v25 }
 0x293   : > { %v2235_v8 = vpop.eup %2234  ;;  %v913_v9 = vmul.f32 0.5, %v853_v3  ;;  %v857_v21 = vadd.f32 %v856_v6, %v2893_v48  ;;  %2000 = vmatmul.mubr.msk.bf16.vlgmr.msra.gmra.mrb[16].mxu0 %vm2934_vm1, %v1851_v1  ;;  %v2209_v1 = vld [vmem:[#allocation10 + $0x8] sm:$0xff]   ;;  %2055 = vmatpush3.bf16.msra.mxu1 %v2208_v61 }
 0x294   : > { %v958_v11 = vmul.f32 %v2235_v8, %v894_v63  ;;  %v973_v12 = vadd.f32 %v957_v7, %v2916_v13  ;;  %2016 = vmatpush3.bf16.msra.mxu0 %v2208_v61  ;;  %2048 = vmatprep.subr.bf16.mxu1 %v2209_v1 }
 0x295   : > { %v937_v14 = vmul.f32 1.442695, %v913_v9  ;;  %v914_v15 = vmul.f32 0.5, %v857_v21  ;;  %2017 = vmatprep.subr.bf16.mxu0 %v2209_v1 }
 0x296   : > { %1535 = vrot.lane.b32.xlu1 %v2962_v10, %s2548_s19  ;;  %1614 = vrot.lane.b32.xlu0 %v853_v3, %s2549_s25  ;;  %v974_v17 = vadd.f32 %v958_v11, %v2924_v30 }
 0x297   : > { %2240 = vpow2.f32 %v937_v14  ;;  %v939_v18 = vmul.f32 1.442695, %v914_v15  ;;  %v860_v20 = vpop.f32.mrb[20].mxu1  ;;  %2056 = vmatpush3.bf16.msra.mxu1 %v2209_v1 }
 0x298   : > { %v2972_v28 = vadd.f32 %v860_v20, %v2891_v47  ;;  %v862_v13 = vpop.f32.mrb[21].mxu1  ;;  %v1854_v29 = vpack.c.bf16 %v974_v17, %v973_v12  ;;  %2018 = vmatpush3.bf16.msra.mxu0 %v2209_v1 }
 0x299   : > { %v2237_v4 = vpop.eup %2236  ;;  %2242 = vpow2.f32 %v939_v18  ;;  %v863_v31 = vadd.f32 %v862_v13, %v2893_v48  ;;  %v864_v34 = vpop.f32.mrb[22].mxu1 }
 0x29a   : > { %v866_v35 = vpop.f32.mrb[23].mxu1  ;;  %1616 = vrot.lane.b32.xlu1 %v857_v21, %s2549_s25  ;;  %1537 = vrot.lane.b32.xlu0 %v2972_v28, %s2548_s19  ;;  %v959_v30 = vmul.f32 %v2237_v4, %v895_v16  ;;  %v2982_v37 = vadd.f32 %v864_v34, %v2891_v47  ;;  %v2211_v4 = vld [vmem:[#allocation10 + $0x18] sm:$0xff]   ;;  %v902_v34 = vunpack.c.h.bf16 %v2869_v26 }
 0x29b   : > { %v2239_v36 = vpop.eup %2238  ;;  %v915_v33 = vmul.f32 0.5, %v863_v31  ;;  %v867_v23 = vadd.f32 %v866_v35, %v2893_v48  ;;  %2003 = vmatprep.mubr.msk.bf16.mxu0 %vm2934_vm1, %v1854_v29 }
 0x29c   : > { %v960_v38 = vmul.f32 %v2239_v36, %v896_v22  ;;  %v975_v39 = vadd.f32 %v959_v30, %v2932_v32  ;;  %v2212_v30 = vld [vmem:[#allocation10 + $0x20] sm:$0xff]  }
 0x29d   : > { %v941_v40 = vmul.f32 1.442695, %v915_v33  ;;  %v916_v41 = vmul.f32 0.5, %v867_v23 }
 0x29e   : > { %1539 = vrot.lane.b32.xlu1 %v2982_v37, %s2548_s19  ;;  %1618 = vrot.lane.b32.xlu0 %v863_v31, %s2549_s25  ;;  %v976_v44 = vadd.f32 %v960_v38, %v845_v55  ;;  %v901_v31 = vunpack.c.l.bf16 %v2869_v26  ;;  %v2213_v26 = vld [vmem:[#allocation10 + $0x28] sm:$0xff]   ;;  %v903_v38 = vunpack.c.l.bf16 %v2874_v27 }
 0x29f   : > { %2244 = vpow2.f32 %v941_v40  ;;  %v943_v45 = vmul.f32 1.442695, %v916_v41  ;;  %v870_v46 = vpop.f32.mrb[24].mxu1  ;;  %v904_v40 = vunpack.c.h.bf16 %v2874_v27  ;;  %v2214_v27 = vld [vmem:[#allocation10 + $0x30] sm:$0xff]  }
 0x2a0   : > { %v2991_v50 = vadd.f32 %v870_v46, %v2891_v47  ;;  %v872_v19 = vpop.f32.mrb[25].mxu1  ;;  %v1857_v32 = vpack.c.bf16 %v976_v44, %v975_v39 }
 0x2a1   : > { %v2241_v51 = vpop.eup %2240  ;;  %2246 = vpow2.f32 %v943_v45  ;;  %v873_v52 = vadd.f32 %v872_v19, %v2893_v48  ;;  %v874_v53 = vpop.f32.mrb[26].mxu1 }
 0x2a2   : > { %v876_v54 = vpop.f32.mrb[27].mxu1  ;;  %1620 = vrot.lane.b32.xlu1 %v867_v23, %s2549_s25  ;;  %1541 = vrot.lane.b32.xlu0 %v2991_v50, %s2548_s19  ;;  %v961_v55 = vmul.f32 %v2241_v51, %v897_v43  ;;  %v3001_v58 = vadd.f32 %v874_v53, %v2891_v47  ;;  %v1838_v51 = vld [vmem:[%s3271_s6] ss:$0 sm:$0xff] }
 0x2a3   : > { %v2243_v56 = vpop.eup %2242  ;;  %v917_v57 = vmul.f32 0.5, %v873_v52  ;;  %v877_v24 = vadd.f32 %v876_v54, %v2893_v48  ;;  %2004 = vmatmul.mubr.msk.bf16.gmra.mrb[20].mxu0 %vm2934_vm1, %v1857_v32  ;;  %v2215_v32 = vld [vmem:[#allocation10 + $0x38] sm:$0xff]  }
 0x2a4   : > { %v962_v59 = vmul.f32 %v2243_v56, %v898_v49  ;;  %v977_v60 = vadd.f32 %v961_v55, %v2952_v0  ;;  %v900_v0 = vunpack.c.h.bf16 %v2866_v25 }
 0x2a5   : > { %v945_v63 = vmul.f32 1.442695, %v917_v57  ;;  %v918_v62 = vmul.f32 0.5, %v877_v24 }
 0x2a6   : > { %1543 = vrot.lane.b32.xlu1 %v3001_v58, %s2548_s19  ;;  %1622 = vrot.lane.b32.xlu0 %v873_v52, %s2549_s25  ;;  %v978_v3 = vadd.f32 %v962_v59, %v2962_v10  ;;  %v2210_v10 = vld [vmem:[#allocation10 + $0x10] sm:$0xff]  }
 0x2a7   : > { %2248 = vpow2.f32 %v945_v63  ;;  %v947_v5 = vmul.f32 1.442695, %v918_v62  ;;  %v880_v6 = vpop.f32.mrb[28].mxu1  ;;  %2019 = vmatprep.subr.bf16.mxu0 %v2210_v10  ;;  %2049 = vmatprep.subr.bf16.mxu1 %v2210_v10 }
 0x2a8   : > { %v3011_v7 = vadd.f32 %v880_v6, %v2891_v47  ;;  %v882_v8 = vpop.f32.mrb[29].mxu1  ;;  %v1860_v9 = vpack.c.bf16 %v978_v3, %v977_v60  ;;  %2020 = vmatpush3.bf16.msra.mxu0 %v2210_v10  ;;  %2057 = vmatpush3.bf16.msra.mxu1 %v2210_v10 }
 0x2a9   : > { %v2245_v21 = vpop.eup %2244  ;;  %2250 = vpow2.f32 %v947_v5  ;;  %v883_v11 = vadd.f32 %v882_v8, %v2893_v48  ;;  %v884_v12 = vpop.f32.mrb[30].mxu1  ;;  %2021 = vmatprep.subr.bf16.mxu0 %v2211_v4  ;;  %2050 = vmatprep.subr.bf16.mxu1 %v2211_v4 }
 0x2aa   : > { %v886_v14 = vpop.f32.mrb[31].mxu1  ;;  %1624 = vrot.lane.b32.xlu1 %v877_v24, %s2549_s25  ;;  %1545 = vrot.lane.b32.xlu0 %v3011_v7, %s2548_s19  ;;  %v963_v25 = vmul.f32 %v2245_v21, %v899_v2  ;;  %v885_v18 = vadd.f32 %v884_v12, %v2891_v47 }
 0x2ab   : > { %v2247_v15 = vpop.eup %2246  ;;  %v919_v16 = vmul.f32 0.5, %v883_v11  ;;  %v887_v17 = vadd.f32 %v886_v14, %v2893_v48  ;;  %2007 = vmatprep.mubr.msk.bf16.mxu0 %vm2934_vm1, %v1860_v9 }
 0x2ac   : > { %v964_v20 = vmul.f32 %v2247_v15, %v900_v0  ;;  %v979_v22 = vadd.f32 %v963_v25, %v2972_v28  ;;  %2022 = vmatpush3.bf16.msra.mxu0 %v2211_v4  ;;  %2058 = vmatpush3.bf16.msra.mxu1 %v2211_v4 }
 0x2ad   : > { %v949_v13 = vmul.f32 1.442695, %v919_v16  ;;  %v920_v29 = vmul.f32 0.5, %v887_v17  ;;  %2023 = vmatprep.subr.bf16.mxu0 %v2212_v30  ;;  %2051 = vmatprep.subr.bf16.mxu1 %v2212_v30 }
 0x2ae   : > { %1547 = vrot.lane.b32.xlu1 %v885_v18, %s2548_s19  ;;  %1626 = vrot.lane.b32.xlu0 %v883_v11, %s2549_s25  ;;  %v980_v48 = vadd.f32 %v964_v20, %v2982_v37  ;;  %s2462_s19 = scalar_lea.vmem %s3209_s29, 2048 }
 0x2af   : > { %2252 = vpow2.f32 %v949_v13  ;;  %v951_v47 = vmul.f32 1.442695, %v920_v29  ;;  %p2463_p3 = scmp.ne.s32.totalorder %s3209_s29, %s2462_s19 }
 0x2b0   : > { %v1863_v28 = vpack.c.bf16 %v980_v48, %v979_v22  ;;  %2024 = vmatpush3.bf16.msra.mxu0 %v2212_v30  ;;  %2059 = vmatpush3.bf16.msra.mxu1 %v2212_v30 }
 0x2b1   : > { %v2249_v35 = vpop.eup %2248  ;;  %2254 = vpow2.f32 %v951_v47  ;;  %2025 = vmatprep.subr.bf16.mxu0 %v2213_v26  ;;  %2052 = vmatprep.subr.bf16.mxu1 %v2213_v26  ;;  %p2464_p5 = pnand %p2463_p3, %p2772_p10 }
 0x2b2   : > { %1628 = vrot.lane.b32.xlu1 %v887_v17, %s2549_s25  ;;  %2008 = vmatmul.mubr.msk.bf16.gmra.mrb[24].mxu0 %vm2934_vm1, %v1863_v28  ;;  %v965_v36 = vmul.f32 %v2249_v35, %v901_v31  ;;  %s2551_s25 = smov [#allocation11]  }
 0x2b3   : > { %v2251_v33 = vpop.eup %2250  ;;  %p2465_p7 = pneg %p2464_p5  ;;  %s2466_s26 = sshll.u32 %s2551_s25, 4  ;;  %s2467_s26 = int_to_ptr.vmem [resolvable:$false] %s2466_s26 }
 0x2b4   : > { %v966_v23 = vmul.f32 %v2251_v33, %v902_v34  ;;  %v981_v37 = vadd.f32 %v965_v36, %v2991_v50  ;;  %2026 = vmatpush3.bf16.msra.mxu0 %v2213_v26  ;;  %2060 = vmatpush3.bf16.msra.mxu1 %v2213_v26  ;;  %s2468_s20 = scalar_lea.vmem %s2467_s26, 4096  ;;  %p2469_p12 = scmp.lt.s32.totalorder %s3209_s29, %s2467_s26 }
 0x2b5   : > { %2027 = vmatprep.subr.bf16.mxu0 %v2214_v27  ;;  %2053 = vmatprep.subr.bf16.mxu1 %v2214_v27  ;;  %p2470_p1 = scmp.lt.s32.totalorder %s2468_s20, %s2462_s19 }
 0x2b6   : > { %v982_v39 = vadd.f32 %v966_v23, %v3001_v58 }
 0x2b7   : > { %p2471_p2 = por %p2470_p1, %p2469_p12 }
 0x2b8   : > { %v1866_v41 = vpack.c.bf16 %v982_v39, %v981_v37  ;;  %2028 = vmatpush3.bf16.msra.mxu0 %v2214_v27  ;;  %2061 = vmatpush3.bf16.msra.mxu1 %v2214_v27 }
 0x2b9   : > { %v2253_v43 = vpop.eup %2252  ;;  %2029 = vmatprep.subr.bf16.mxu0 %v2215_v32  ;;  %2054 = vmatprep.subr.bf16.mxu1 %v2215_v32  ;;  %p2472_p13 = pnand %p2471_p2, %p2465_p7 }
 0x2ba   : > { %2011 = vmatprep.mubr.msk.bf16.mxu0 %vm2934_vm1, %v1866_v41  ;;  %v967_v44 = vmul.f32 %v2253_v43, %v903_v38 }
 0x2bb   : > { %v2255_v45 = vpop.eup %2254 }
 0x2bc   : > { %v968_v46 = vmul.f32 %v2255_v45, %v904_v40  ;;  %v983_v49 = vadd.f32 %v967_v44, %v3011_v7  ;;  %2030 = vmatpush3.bf16.msra.mxu0 %v2215_v32  ;;  %2062 = vmatpush3.bf16.msra.mxu1 %v2215_v32  ;;  %v2550_v45 = vmov 0.0  }
 0x2bd   : > { %1470 = vst [vmem:[%s3043_s28 + $0x10] sm:$0xff] %v2550_v45  ;;  %1468 = vst [vmem:[%s3043_s28] sm:$0xff] %v2550_v45 }
 0x2be   : > { %v984_v50 = vadd.f32 %v968_v46, %v885_v18  ;;  %1469 = vst [vmem:[%s3043_s28 + $0x8] sm:$0xff] %v2550_v45  ;;  %1471 = vst [vmem:[%s3043_s28 + $0x18] sm:$0xff] %v2550_v45 }
 0x2bf   : > { %1472 = vst [vmem:[%s3043_s28 + $0x20] sm:$0xff] %v2550_v45  ;;  %1473 = vst [vmem:[%s3043_s28 + $0x28] sm:$0xff] %v2550_v45 }
 0x2c0   : > { %v1869_v19 = vpack.c.bf16 %v984_v50, %v983_v49  ;;  %1474 = vst [vmem:[%s3043_s28 + $0x30] sm:$0xff] %v2550_v45  ;;  %1475 = vst [vmem:[%s3043_s28 + $0x38] sm:$0xff] %v2550_v45 }
 0x2c1   : > { %1476 = vst [vmem:[%s3043_s28 + $0x40] sm:$0xff] %v2550_v45  ;;  %1477 = vst [vmem:[%s3043_s28 + $0x48] sm:$0xff] %v2550_v45 }
 0x2c2   : > { %2012 = vmatmul.mubr.msk.bf16.gmra.mrb[28].mxu0 %vm2934_vm1, %v1869_v19  ;;  %1478 = vst [vmem:[%s3043_s28 + $0x50] sm:$0xff] %v2550_v45  ;;  %1479 = vst [vmem:[%s3043_s28 + $0x58] sm:$0xff] %v2550_v45  ;;  %v3070_v19 = vld [vmem:[%s3273_s8] ss:$0 sm:$0xff] }
 0x2c3   : > { %1480 = vst [vmem:[%s3043_s28 + $0x60] sm:$0xff] %v2550_v45  ;;  %1481 = vst [vmem:[%s3043_s28 + $0x68] sm:$0xff] %v2550_v45 }
 0x2c4   : > { %1482 = vst [vmem:[%s3043_s28 + $0x70] sm:$0xff] %v2550_v45  ;;  %1483 = vst [vmem:[%s3043_s28 + $0x78] sm:$0xff] %v2550_v45 }
 0x2e4   : > { %v3061_v46 = vpop.permute.xlu0 %1517 }
 0x2e7   : > { %v3063_v49 = vpop.permute.xlu1 %1600 }
 0x2e8   : > { %v3065_v50 = vpop.permute.xlu0 %1598 }
 0x2ec   : > { %v1522_v27 = vpop.permute.xlu1 %1521 }
 0x366   : > { %v2001_v52 = vpop.f32.mrb[16].mxu0 }
 0x367   : > { %v1126_v53 = vadd.f32 %v2001_v52, %v1838_v51  ;;  %v1117_v54 = vpop.f32.mrb[17].mxu0 }
 0x368   : > { %v1118_v55 = vadd.f32 %v1838_v51, %v1117_v54  ;;  %v2002_v42 = vpop.f32.mrb[18].mxu0 }
 0x369   : > { %v1129_v56 = vadd.f32 %v2002_v42, %v1838_v51  ;;  %v1120_v57 = vpop.f32.mrb[19].mxu0  ;;  %v1182_v58 = vmax.f32 %v1126_v53, 0.0 }
 0x36a   : > { %v1121_v24 = vadd.f32 %v1838_v51, %v1120_v57  ;;  %v1180_v60 = vmax.f32 %v1118_v55, 0.0  ;;  %v3074_v55 = vpop.permute.xlu0 %1519 }
 0x36b   : > { %v1183_v59 = vmax.f32 %v1129_v56, 0.0 }
 0x36c   : > { %v1181_v61 = vmax.f32 %v1121_v24, 0.0 }
 0x36d   : > { %v1197_v63 = vpack.c.bf16 %v1183_v59, %v1182_v58  ;;  %v1524_v59 = vpop.permute.xlu1 %1523 }
 0x36e   : > { %v1196_v62 = vpack.c.bf16 %v1181_v61, %v1180_v60 }
 0x370   : > { %2031 = vmatprep.mubr.bf16.mxu0 %v1196_v62 }
 0x371   : > { %2032 = vmatmul.mubr.bf16.vlgmr.msra.gmra.mrb[32].mxu0 %v1197_v63  ;;  %v1603_v63 = vpop.permute.xlu0 %1602  ;;  %v1605_v62 = vpop.permute.xlu1 %1604 }
 0x376   : > { %v2005_v1 = vpop.f32.mrb[20].mxu0 }
 0x377   : > { %v1142_v2 = vadd.f32 %v2005_v1, %v1838_v51  ;;  %v1133_v3 = vpop.f32.mrb[21].mxu0 }
 0x378   : > { %v1134_v5 = vadd.f32 %v1838_v51, %v1133_v3  ;;  %v2006_v6 = vpop.f32.mrb[22].mxu0 }
 0x379   : > { %v1145_v0 = vadd.f32 %v2006_v6, %v1838_v51  ;;  %v1136_v7 = vpop.f32.mrb[23].mxu0  ;;  %v1186_v9 = vmax.f32 %v1142_v2, 0.0  ;;  %v3078_v2 = vpop.permute.xlu0 %1525 }
 0x37a   : > { %v1137_v8 = vadd.f32 %v1838_v51, %v1136_v7  ;;  %v1184_v11 = vmax.f32 %v1134_v5, 0.0  ;;  %v3080_v7 = vpop.permute.xlu1 %1527 }
 0x37b   : > { %v1187_v21 = vmax.f32 %v1145_v0, 0.0 }
 0x37c   : > { %v1185_v12 = vmax.f32 %v1137_v8, 0.0 }
 0x37d   : > { %v1199_v10 = vpack.c.bf16 %v1187_v21, %v1186_v9 }
 0x37e   : > { %v1198_v14 = vpack.c.bf16 %v1185_v12, %v1184_v11 }
 0x380   : > { %2035 = vmatprep.mubr.bf16.mxu0 %v1198_v14 }
 0x381   : > { %2036 = vmatmul.mubr.bf16.gmra.mrb[36].mxu0 %v1199_v10 }
 0x385   : > { %v2009_v25 = vpop.f32.mrb[24].mxu0 }
 0x386   : > { %v1158_v15 = vadd.f32 %v2009_v25, %v1838_v51  ;;  %v1149_v16 = vpop.f32.mrb[25].mxu0 }
 0x387   : > { %v1150_v17 = vadd.f32 %v1838_v51, %v1149_v16  ;;  %v2010_v18 = vpop.f32.mrb[26].mxu0 }
 0x388   : > { %v1161_v20 = vadd.f32 %v2010_v18, %v1838_v51  ;;  %v1152_v22 = vpop.f32.mrb[27].mxu0  ;;  %v1190_v29 = vmax.f32 %v1158_v15, 0.0 }
 0x389   : > { %v1153_v13 = vadd.f32 %v1838_v51, %v1152_v22  ;;  %v1188_v31 = vmax.f32 %v1150_v17, 0.0  ;;  %v3086_v22 = vpop.permute.xlu0 %1606 }
 0x38a   : > { %v1191_v4 = vmax.f32 %v1161_v20, 0.0 }
 0x38b   : > { %v1189_v48 = vmax.f32 %v1153_v13, 0.0 }
 0x38c   : > { %v1201_v47 = vpack.c.bf16 %v1191_v4, %v1190_v29  ;;  %v3088_v4 = vpop.permute.xlu1 %1608 }
 0x38d   : > { %v1200_v34 = vpack.c.bf16 %v1189_v48, %v1188_v31  ;;  %v1530_v31 = vpop.permute.xlu0 %1529 }
 0x38f   : > { %2039 = vmatprep.mubr.bf16.mxu1 %v1200_v34 }
 0x390   : > { %2040 = vmatmul.mubr.bf16.vlgmr.msra.gmra.mrb[32].mxu1 %v1201_v47  ;;  %v3090_v34 = vpop.permute.xlu1 %1531 }
 0x395   : > { %v2013_v28 = vpop.f32.mrb[28].mxu0 }
 0x396   : > { %v1174_v35 = vadd.f32 %v2013_v28, %v1838_v51  ;;  %v1165_v30 = vpop.f32.mrb[29].mxu0 }
 0x397   : > { %v1166_v36 = vadd.f32 %v1838_v51, %v1165_v30  ;;  %v2014_v33 = vpop.f32.mrb[30].mxu0 }
 0x398   : > { %v1177_v23 = vadd.f32 %v2014_v33, %v1838_v51  ;;  %v1168_v37 = vpop.f32.mrb[31].mxu0  ;;  %v1194_v38 = vmax.f32 %v1174_v35, 0.0 }
 0x399   : > { %v1169_v26 = vadd.f32 %v1838_v51, %v1168_v37  ;;  %v1192_v40 = vmax.f32 %v1166_v36, 0.0 }
 0x39a   : > { %v1195_v39 = vmax.f32 %v1177_v23, 0.0 }
 0x39b   : > { %v1193_v41 = vmax.f32 %v1169_v26, 0.0  ;;  %v1611_v26 = vpop.permute.xlu0 %1610 }
 0x39c   : > { %v1203_v43 = vpack.c.bf16 %v1195_v39, %v1194_v38 }
 0x39d   : > { %v1202_v44 = vpack.c.bf16 %v1193_v41, %v1192_v40 }
 0x39f   : > { %2043 = vmatprep.mubr.bf16.mxu1 %v1202_v44 }
 0x3a0   : > { %2044 = vmatmul.mubr.bf16.gmra.mrb[36].mxu1 %v1203_v43 }
 0x444   : > { %v2033_v32 = vpop.f32.mrb[32].mxu0 }
 0x445   : > { %v1318_v51 = vadd.f32 %v2033_v32, %v3070_v19  ;;  %v1309_v52 = vpop.f32.mrb[33].mxu0 }
 0x446   : > { %v1310_v53 = vadd.f32 %v3070_v19, %v1309_v52  ;;  %v2034_v54 = vpop.f32.mrb[34].mxu0 }
 0x447   : > { %v1882_v42 = vmul.f32 -1.442695, %v1318_v51  ;;  %v1321_v56 = vadd.f32 %v2034_v54, %v3070_v19  ;;  %v1312_v57 = vpop.f32.mrb[35].mxu0 }
 0x448   : > { %v1880_v24 = vmul.f32 -1.442695, %v1310_v53  ;;  %v1313_v58 = vadd.f32 %v3070_v19, %v1312_v57 }
 0x449   : > { %2256 = vpow2.f32 %v1882_v42  ;;  %v1883_v60 = vmul.f32 -1.442695, %v1321_v56 }
 0x44a   : > { %2258 = vpow2.f32 %v1880_v24  ;;  %v1881_v61 = vmul.f32 -1.442695, %v1313_v58 }
 0x44b   : > { %2260 = vpow2.f32 %v1883_v60 }
 0x44c   : > { %2262 = vpow2.f32 %v1881_v61 }
 0x453   : > { %v2257_v1 = vpop.eup %2256 }
 0x454   : > { %v2259_v3 = vpop.eup %2258  ;;  %v1422_v5 = vadd.f32 1.0, %v2257_v1  ;;  %v2037_v6 = vpop.f32.mrb[36].mxu0 }
 0x455   : > { %v2261_v0 = vpop.eup %2260  ;;  %v1420_v8 = vadd.f32 1.0, %v2259_v3  ;;  %v1334_v9 = vadd.f32 %v2037_v6, %v3070_v19  ;;  %v1325_v21 = vpop.f32.mrb[37].mxu0 }
 0x456   : > { %v2263_v11 = vpop.eup %2262  ;;  %2264 = vrcp.f32 %v1422_v5  ;;  %v1423_v12 = vadd.f32 1.0, %v2261_v0  ;;  %v1326_v10 = vadd.f32 %v3070_v19, %v1325_v21  ;;  %v2038_v14 = vpop.f32.mrb[38].mxu0 }
 0x457   : > { %2266 = vrcp.f32 %v1420_v8  ;;  %v1421_v25 = vadd.f32 1.0, %v2263_v11  ;;  %v1886_v15 = vmul.f32 -1.442695, %v1334_v9  ;;  %v1337_v16 = vadd.f32 %v2038_v14, %v3070_v19  ;;  %v1328_v17 = vpop.f32.mrb[39].mxu0 }
 0x458   : > { %2268 = vrcp.f32 %v1423_v12  ;;  %v1884_v18 = vmul.f32 -1.442695, %v1326_v10  ;;  %v1329_v20 = vadd.f32 %v3070_v19, %v1328_v17 }
 0x459   : > { %2270 = vrcp.f32 %v1421_v25  ;;  %v1887_v13 = vmul.f32 -1.442695, %v1337_v16 }
 0x45a   : > { %2272 = vpow2.f32 %v1886_v15  ;;  %v1885_v29 = vmul.f32 -1.442695, %v1329_v20 }
 0x45b   : > { %2274 = vpow2.f32 %v1884_v18 }
 0x45c   : > { %2276 = vpow2.f32 %v1887_v13 }
 0x45d   : > { %2278 = vpow2.f32 %v1885_v29 }
 0x460   : > { %v2265_v48 = vpop.eup %2264 }
 0x461   : > { %v2267_v47 = vpop.eup %2266  ;;  %1487 = vst.msk [vmem:[%s3043_s28 + $0x10] sm:$0xff] %vm1484_vm2, %v2265_v48 }
 0x462   : > { %v2269_v28 = vpop.eup %2268  ;;  %1568 = vst.msk [vmem:[%s3043_s28 + $0x10] sm:$0xff] %vm1565_vm3, %v1522_v27 }
 0x463   : > { %1485 = vst.msk [vmem:[%s3043_s28] sm:$0xff] %vm1484_vm2, %v2267_v47  ;;  %v2271_v35 = vpop.eup %2270  ;;  %1488 = vst.msk [vmem:[%s3043_s28 + $0x18] sm:$0xff] %vm1484_vm2, %v2269_v28  ;;  %v2041_v30 = vpop.f32.mrb[32].mxu1 }
 0x464   : > { %1649 = vst.msk [vmem:[%s3043_s28 + $0x10] sm:$0xff] %vm1646_vm4, %v1603_v63  ;;  %v2273_v36 = vpop.eup %2272  ;;  %v1350_v33 = vadd.f32 %v2041_v30, %v3070_v19  ;;  %v1341_v23 = vpop.f32.mrb[33].mxu1 }
 0x465   : > { %1566 = vst.msk [vmem:[%s3043_s28] sm:$0xff] %vm1565_vm3, %v3061_v46  ;;  %1569 = vst.msk [vmem:[%s3043_s28 + $0x18] sm:$0xff] %vm1565_vm3, %v1524_v59  ;;  %v2275_v37 = vpop.eup %2274  ;;  %v1426_v38 = vadd.f32 1.0, %v2273_v36  ;;  %v1342_v39 = vadd.f32 %v3070_v19, %v1341_v23  ;;  %v2042_v40 = vpop.f32.mrb[34].mxu1 }
 0x466   : > { %1647 = vst.msk [vmem:[%s3043_s28] sm:$0xff] %vm1646_vm4, %v3065_v50  ;;  %1650 = vst.msk [vmem:[%s3043_s28 + $0x18] sm:$0xff] %vm1646_vm4, %v1605_v62  ;;  %v2277_v41 = vpop.eup %2276  ;;  %v1424_v43 = vadd.f32 1.0, %v2275_v37  ;;  %v1353_v44 = vadd.f32 %v2042_v40, %v3070_v19  ;;  %v1344_v45 = vpop.f32.mrb[35].mxu1  ;;  %v1890_v32 = vmul.f32 -1.442695, %v1350_v33 }
 0x467   : > { %1486 = vst.msk [vmem:[%s3043_s28 + $0x8] sm:$0xff] %vm1484_vm2, %v2271_v35  ;;  %v2279_v46 = vpop.eup %2278  ;;  %v1613_v50 = vpop.permute.xlu1 %1612  ;;  %2280 = vrcp.f32 %v1426_v38  ;;  %v1427_v27 = vadd.f32 1.0, %v2277_v41  ;;  %v1345_v51 = vadd.f32 %v3070_v19, %v1344_v45  ;;  %v1888_v53 = vmul.f32 -1.442695, %v1342_v39 }
 0x468   : > { %1567 = vst.msk [vmem:[%s3043_s28 + $0x8] sm:$0xff] %vm1565_vm3, %v3074_v55  ;;  %2282 = vrcp.f32 %v1424_v43  ;;  %v1425_v52 = vadd.f32 1.0, %v2279_v46  ;;  %v1891_v54 = vmul.f32 -1.442695, %v1353_v44  ;;  %v3124_v55 = vpop.permute.xlu0 %1533 }
 0x469   : > { %1648 = vst.msk [vmem:[%s3043_s28 + $0x8] sm:$0xff] %vm1646_vm4, %v3063_v49  ;;  %2284 = vrcp.f32 %v1427_v27  ;;  %v1889_v49 = vmul.f32 -1.442695, %v1345_v51 }
 0x46a   : > { %2286 = vrcp.f32 %v1425_v52 }
 0x46b   : > { %2288 = vpow2.f32 %v1890_v32  ;;  %v3126_v42 = vpop.permute.xlu1 %1535 }
 0x46c   : > { %2290 = vpow2.f32 %v1888_v53  ;;  %v1615_v57 = vpop.permute.xlu0 %1614 }
 0x46d   : > { %2292 = vpow2.f32 %v1891_v54 }
 0x46e   : > { %2294 = vpow2.f32 %v1889_v49 }
 0x46f   : > { %v3130_v59 = vpop.permute.xlu1 %1616 }
 0x470   : > { %v1538_v21 = vpop.permute.xlu0 %1537 }
 0x471   : > { %v2281_v56 = vpop.eup %2280 }
 0x472   : > { %v2283_v24 = vpop.eup %2282  ;;  %1491 = vst.msk [vmem:[%s3043_s28 + $0x30] sm:$0xff] %vm1484_vm2, %v2281_v56 }
 0x473   : > { %v2285_v58 = vpop.eup %2284  ;;  %1572 = vst.msk [vmem:[%s3043_s28 + $0x30] sm:$0xff] %vm1565_vm3, %v1530_v31  ;;  %v2045_v60 = vpop.f32.mrb[36].mxu1 }
 0x474   : > { %1489 = vst.msk [vmem:[%s3043_s28 + $0x20] sm:$0xff] %vm1484_vm2, %v2283_v24  ;;  %v2287_v61 = vpop.eup %2286  ;;  %1492 = vst.msk [vmem:[%s3043_s28 + $0x38] sm:$0xff] %vm1484_vm2, %v2285_v58  ;;  %v1366_v63 = vadd.f32 %v2045_v60, %v3070_v19  ;;  %v1357_v62 = vpop.f32.mrb[37].mxu1 }
 0x475   : > { %1653 = vst.msk [vmem:[%s3043_s28 + $0x30] sm:$0xff] %vm1646_vm4, %v1611_v26  ;;  %v2289_v1 = vpop.eup %2288  ;;  %v1358_v3 = vadd.f32 %v3070_v19, %v1357_v62  ;;  %v2046_v5 = vpop.f32.mrb[38].mxu1 }
 0x476   : > { %1570 = vst.msk [vmem:[%s3043_s28 + $0x20] sm:$0xff] %vm1565_vm3, %v3078_v2  ;;  %1573 = vst.msk [vmem:[%s3043_s28 + $0x38] sm:$0xff] %vm1565_vm3, %v3090_v34  ;;  %v2291_v6 = vpop.eup %2290  ;;  %v1430_v2 = vadd.f32 1.0, %v2289_v1  ;;  %v1369_v0 = vadd.f32 %v2046_v5, %v3070_v19  ;;  %v1360_v8 = vpop.f32.mrb[39].mxu1  ;;  %v1894_v25 = vmul.f32 -1.442695, %v1366_v63 }
 0x477   : > { %1651 = vst.msk [vmem:[%s3043_s28 + $0x20] sm:$0xff] %vm1646_vm4, %v3086_v22  ;;  %1654 = vst.msk [vmem:[%s3043_s28 + $0x38] sm:$0xff] %vm1646_vm4, %v1613_v50  ;;  %v2293_v9 = vpop.eup %2292  ;;  %v1428_v11 = vadd.f32 1.0, %v2291_v6  ;;  %v1361_v12 = vadd.f32 %v3070_v19, %v1360_v8  ;;  %v1540_v15 = vpop.permute.xlu1 %1539  ;;  %v1892_v16 = vmul.f32 -1.442695, %v1358_v3 }
 0x478   : > { %1490 = vst.msk [vmem:[%s3043_s28 + $0x28] sm:$0xff] %vm1484_vm2, %v2287_v61  ;;  %v2295_v10 = vpop.eup %2294  ;;  %2296 = vrcp.f32 %v1430_v2  ;;  %v1431_v14 = vadd.f32 1.0, %v2293_v9  ;;  %v1895_v17 = vmul.f32 -1.442695, %v1369_v0  ;;  %v1619_v20 = vpop.permute.xlu0 %1618 }
 0x479   : > { %1571 = vst.msk [vmem:[%s3043_s28 + $0x28] sm:$0xff] %vm1565_vm3, %v3080_v7  ;;  %2298 = vrcp.f32 %v1428_v11  ;;  %v1429_v7 = vadd.f32 1.0, %v2295_v10  ;;  %v1893_v18 = vmul.f32 -1.442695, %v1361_v12 }
 0x47a   : > { %1652 = vst.msk [vmem:[%s3043_s28 + $0x28] sm:$0xff] %vm1646_vm4, %v3088_v4  ;;  %2300 = vrcp.f32 %v1431_v14 }
 0x47b   : > { %2302 = vrcp.f32 %v1429_v7  ;;  %v1621_v19 = vpop.permute.xlu1 %1620 }
 0x47c   : > { %2304 = vpow2.f32 %v1894_v25  ;;  %v1542_v29 = vpop.permute.xlu0 %1541 }
 0x47d   : > { %2306 = vpow2.f32 %v1892_v16 }
 0x47e   : > { %2308 = vpow2.f32 %v1895_v17 }
 0x47f   : > { %2310 = vpow2.f32 %v1893_v18  ;;  %v1544_v48 = vpop.permute.xlu1 %1543 }
 0x480   : > { %v1623_v33 = vpop.permute.xlu0 %1622 }
 0x482   : > { %v2297_v22 = vpop.eup %2296 }
 0x483   : > { %v2299_v13 = vpop.eup %2298  ;;  %1495 = vst.msk [vmem:[%s3043_s28 + $0x50] sm:$0xff] %vm1484_vm2, %v2297_v22  ;;  %v1625_v26 = vpop.permute.xlu1 %1624 }
 0x484   : > { %v2301_v4 = vpop.eup %2300  ;;  %1576 = vst.msk [vmem:[%s3043_s28 + $0x50] sm:$0xff] %vm1565_vm3, %v1538_v21  ;;  %v1546_v38 = vpop.permute.xlu0 %1545 }
 0x485   : > { %1493 = vst.msk [vmem:[%s3043_s28 + $0x40] sm:$0xff] %vm1484_vm2, %v2299_v13  ;;  %v2303_v31 = vpop.eup %2302  ;;  %1496 = vst.msk [vmem:[%s3043_s28 + $0x58] sm:$0xff] %vm1484_vm2, %v2301_v4 }
 0x486   : > { %1657 = vst.msk [vmem:[%s3043_s28 + $0x50] sm:$0xff] %vm1646_vm4, %v1619_v20  ;;  %v2305_v47 = vpop.eup %2304 }
 0x487   : > { %1574 = vst.msk [vmem:[%s3043_s28 + $0x40] sm:$0xff] %vm1565_vm3, %v3124_v55  ;;  %1577 = vst.msk [vmem:[%s3043_s28 + $0x58] sm:$0xff] %vm1565_vm3, %v1540_v15  ;;  %v2307_v34 = vpop.eup %2306  ;;  %v1434_v28 = vadd.f32 1.0, %v2305_v47  ;;  %v1548_v39 = vpop.permute.xlu1 %1547 }
 0x488   : > { %1655 = vst.msk [vmem:[%s3043_s28 + $0x40] sm:$0xff] %vm1646_vm4, %v1615_v57  ;;  %1658 = vst.msk [vmem:[%s3043_s28 + $0x58] sm:$0xff] %vm1646_vm4, %v1621_v19  ;;  %v2309_v35 = vpop.eup %2308  ;;  %v1432_v30 = vadd.f32 1.0, %v2307_v34  ;;  %v1627_v44 = vpop.permute.xlu0 %1626 }
 0x489   : > { %1494 = vst.msk [vmem:[%s3043_s28 + $0x48] sm:$0xff] %vm1484_vm2, %v2303_v31  ;;  %v2311_v36 = vpop.eup %2310  ;;  %2312 = vrcp.f32 %v1434_v28  ;;  %v1435_v23 = vadd.f32 1.0, %v2309_v35 }
 0x48a   : > { %1575 = vst.msk [vmem:[%s3043_s28 + $0x48] sm:$0xff] %vm1565_vm3, %v3126_v42  ;;  %2314 = vrcp.f32 %v1432_v30  ;;  %v1433_v37 = vadd.f32 1.0, %v2311_v36 }
 0x48b   : > { %1656 = vst.msk [vmem:[%s3043_s28 + $0x48] sm:$0xff] %vm1646_vm4, %v3130_v59  ;;  %2316 = vrcp.f32 %v1435_v23  ;;  %v1629_v46 = vpop.permute.xlu1 %1628 }
 0x48c   : > { %2318 = vrcp.f32 %v1433_v37 }
 0x493   : > { %v2313_v40 = vpop.eup %2312 }
 0x494   : > { %v2315_v41 = vpop.eup %2314  ;;  %1499 = vst.msk [vmem:[%s3043_s28 + $0x70] sm:$0xff] %vm1484_vm2, %v2313_v40 }
 0x495   : > { %v2317_v43 = vpop.eup %2316  ;;  %1580 = vst.msk [vmem:[%s3043_s28 + $0x70] sm:$0xff] %vm1565_vm3, %v1546_v38 }
 0x496   : > { %1497 = vst.msk [vmem:[%s3043_s28 + $0x60] sm:$0xff] %vm1484_vm2, %v2315_v41  ;;  %v2319_v45 = vpop.eup %2318  ;;  %1500 = vst.msk [vmem:[%s3043_s28 + $0x78] sm:$0xff] %vm1484_vm2, %v2317_v43 }
 0x497   : > { %1661 = vst.msk [vmem:[%s3043_s28 + $0x70] sm:$0xff] %vm1646_vm4, %v1627_v44 }
 0x498   : > { %1578 = vst.msk [vmem:[%s3043_s28 + $0x60] sm:$0xff] %vm1565_vm3, %v1542_v29  ;;  %1581 = vst.msk [vmem:[%s3043_s28 + $0x78] sm:$0xff] %vm1565_vm3, %v1548_v39 }
 0x499   : > { %1659 = vst.msk [vmem:[%s3043_s28 + $0x60] sm:$0xff] %vm1646_vm4, %v1623_v33  ;;  %1662 = vst.msk [vmem:[%s3043_s28 + $0x78] sm:$0xff] %vm1646_vm4, %v1629_v46 }
 0x49a   : > { %1498 = vst.msk [vmem:[%s3043_s28 + $0x68] sm:$0xff] %vm1484_vm2, %v2319_v45 }
 0x49b   : > { %1579 = vst.msk [vmem:[%s3043_s28 + $0x68] sm:$0xff] %vm1565_vm3, %v1544_v48 }
 0x49c   : > { %1660 = vst.msk [vmem:[%s3043_s28 + $0x68] sm:$0xff] %vm1646_vm4, %v1625_v26 }
 0x49d   : > { %2475 = shalt.err (!%p2472_p13)
}
 0x49e   : > { %s2476_s18 = scalar_lea.hbm %s3207_s22, 2048  ;;  %s2480_s21 = scalar_lea.hbm %s3306_s17, 4096 }
 0x49f   : > { %p2477_p9 = scmp.ne.s32.totalorder %s3207_s22, %s2476_s18  ;;  %p2481_p4 = scmp.lt.u32.totalorder %s3207_s22, %s3306_s17 }
 0x4a0   : > { %p2482_p8 = scmp.lt.u32.totalorder %s2480_s21, %s2476_s18  ;;  %p2484_p3 = scmp.lt.u32.totalorder %s2476_s18, %s3207_s22 }
 0x4a1   : > { %p2478_p0 = pnand %p2477_p9, %p2772_p10 }
 0x4a2   : > { %p2483_p6 = por %p2482_p8, %p2481_p4 }
 0x4a3   : > { %p2479_p11 = pneg %p2478_p0 }
 0x4a4   : > { %p2485_p5 = por %p2484_p3, %p2483_p6 }
 0x4a6   : > { %p2486_p7 = pnand %p2485_p5, %p2479_p11 }
 0x4a8   : > { %2489 = shalt.err (!%p2486_p7)
}
 0x4a9   : > { %s2552_s15 = smov 128   ;;  %s2553_s19 = smov 8  }
 0x4aa   : > { %2081 = dma.vmem_to_hbm [thread:$0]  (%p2772_p10), %s3209_s29, 2048, %s3207_s22, %s1664_s9, %s2552_s15, %s2552_s15, %s2553_s19  }
 0x4ab PF: > { %s3307_s25 = sld [smem:[#allocation16_spill]]  ;;  %s3308_s26 = sld [smem:[#allocation17_spill]] }
 0x4ac   : > { %p3310_p1 = scmp.ge.s32.totalorder %s2536_s12, 2 }
 0x4b1   : > { %s1692_s20 = sand.u32 1, %s3307_s25   ;;  %p3309_p12 = scmp.ne.s32.totalorder %s3308_s26, 0 }
 0x4b2   : > { %s1693_s18 = scalar_lea.sflag [#allocation4], %s1692_s20 }
 0x4b3   : > { %p2101_p2 = pnand %p3310_p1, %p3309_p12 }
 0x4b5   : > { %2519 = dma.done.wait (!%p2101_p2), %s1693_s18, 2048  }
 0x4b6   : > { %2521 = vsyncadd (!%p2101_p2), %s1693_s18, 4294965248  ;;  %p24_p13 = scmp.ge.s32.totalorder %s2762_s14, 4   ;;  %s3311_s30 = smov %s2528_s10 }
 0x4b7   : > { %s3312_s10 = smov %s2532_s11  ;;  %s3313_s11 = smov %s2778_s27 }
 0x4b8   : > { %s3314_s12 = smov %s2762_s14  ;;  %26 = sbr.rel (!%p24_p13) target bundleno = 9 (0x9), region = 117 }
 0x4bf   :  { %1698 = vsyncpa [#allocation3], 1 }
 0x4c0   :  { %1700 = vsyncpa [#allocation3 + $0x1], 1 }
 0x4c1   :  { %1701 = vsyncpa [#allocation6], 1 }
 0x4c2   :  { %1702 = vsyncpa [#allocation9], 1 }
 0x4c3   :  { %1703 = vsyncpa [#allocation4], 1 }
 0x4c4   :  { %1705 = vsyncpa [#allocation4 + $0x1], 1 }

</bundles_post_ra>
